<compile_context>
chip_gen: v7x
topology: tpu7x:2x2x1
jax: 0.10.0
libtpu: 0.0.40
codegen_flags: <defaults>
</compile_context>

<pallas_src>
import functools
import math

import jax
import jax.numpy as jnp
from jax import lax
from jax.experimental import pallas as pl
from jax.experimental.pallas import tpu as pltpu

# ----- model config (small, synthetic) -----
B, S = 2, 8              # batch, max_length (padding/truncation target)
HIDDEN = 32
NHEAD = 2
HEAD_DIM = HIDDEN // NHEAD
FFN = 64
VOCAB = 128
NLAYERS = 2
EPS = 1e-12
NEG = -1e9               # additive-mask constant (pipeline is f32 end to end)


# ---------------- in-kernel helpers ----------------
def _ln(x, g, b):
    mu = jnp.mean(x, axis=-1, keepdims=True)
    xc = x - mu
    var = jnp.mean(xc * xc, axis=-1, keepdims=True)
    return xc * lax.rsqrt(var + EPS) * g + b


def _gelu(y):
    # TODO(synk): HF BERT 'gelu' is the exact erf form; tanh approximation used here
    # (erf has no guaranteed Mosaic lowering) — tiny numeric drift vs. real checkpoints.
    return 0.5 * y * (1.0 + jnp.tanh(0.7978845608028654 * (y + 0.044715 * y * y * y)))


# ---------------- the single fused forward kernel ----------------
def _make_fused_kernel(n_rows, emit_hidden):
    scale = 1.0 / math.sqrt(HEAD_DIM)
    nt = (((1,), (1,)), ((), ()))        # contract last dims (q @ k^T without transpose)

    def kernel(*refs):
        (ids_ref, ptemb_ref, bias_ref, eg_ref, eb_ref,
         wq_ref, bq_ref, wk_ref, bk_ref, wv_ref, bv_ref,
         wo_ref, bo_ref, g1_ref, be1_ref,
         w1_ref, b1_ref, w2_ref, b2_ref, g2_ref, be2_ref,
         mw_ref, mb_ref, mg_ref, mbe_ref, wemb_ref, vb_ref) = refs[:27]
        logits_ref = refs[27]
        hid_ref = refs[28] if emit_hidden else None

        # ---- embeddings (in-kernel): one-hot @ word_emb (MXU), fused pos/type, LN ----
        ids = ids_ref[...]                                              # (R, 1) int32
        iota = lax.broadcasted_iota(jnp.int32, (n_rows, VOCAB), 1)
        onehot = (iota == ids).astype(jnp.float32)                      # (R, VOCAB)
        x = jnp.dot(onehot, wemb_ref[...], preferred_element_type=jnp.float32)
        x = _ln(x + ptemb_ref[...], eg_ref[...], eb_ref[...])           # (R, H)
        if emit_hidden:
            hid_ref[0] = x

        bias = bias_ref[...]                                            # (R, R) additive mask

        for l in range(NLAYERS):
            # per-head weights are leading-axis blocks -> no lane slicing, no concat
            attn = None
            for h in range(NHEAD):
                q = jnp.dot(x, wq_ref[l, h], preferred_element_type=jnp.float32) + bq_ref[l, h]
                k = jnp.dot(x, wk_ref[l, h], preferred_element_type=jnp.float32) + bk_ref[l, h]
                v = jnp.dot(x, wv_ref[l, h], preferred_element_type=jnp.float32) + bv_ref[l, h]
                s = lax.dot_general(q, k, nt, preferred_element_type=jnp.float32)  # (R, R)
                s = s * scale + bias
                s = s - jnp.max(s, axis=-1, keepdims=True)
                p = jnp.exp(s)
                p = p * pl.reciprocal(jnp.sum(p, axis=-1, keepdims=True), approx=True)
                ctx = jnp.dot(p, v, preferred_element_type=jnp.float32)             # (R, HD)
                part = jnp.dot(ctx, wo_ref[l, h], preferred_element_type=jnp.float32)  # (R, H)
                attn = part if attn is None else attn + part
            attn = attn + bo_ref[l]
            x = _ln(x + attn, g1_ref[l], be1_ref[l])                    # add & LN

            hmid = _gelu(jnp.dot(x, w1_ref[l], preferred_element_type=jnp.float32) + b1_ref[l])
            ffn = jnp.dot(hmid, w2_ref[l], preferred_element_type=jnp.float32) + b2_ref[l]
            x = _ln(x + ffn, g2_ref[l], be2_ref[l])                     # add & LN
            if emit_hidden:
                hid_ref[l + 1] = x

        # ---- MLM head: dense + gelu + LN + tied decoder (contract last dims, no .T) ----
        hm = _gelu(jnp.dot(x, mw_ref[...], preferred_element_type=jnp.float32) + mb_ref[...])
        hm = _ln(hm, mg_ref[...], mbe_ref[...])
        logits_ref[...] = lax.dot_general(hm, wemb_ref[...], nt,
                                          preferred_element_type=jnp.float32) + vb_ref[...]

    return kernel


# ---------------- deterministic parameter init (pre-stacked / per-head layouts) ----------------
def init_params(key):
    keys = iter(jax.random.split(key, 64))

    def nrm(shape, scale=0.02):
        return scale * jax.random.normal(next(keys), shape, jnp.float32)

    L = NLAYERS
    return {
        "word_emb": nrm((VOCAB, HIDDEN)),
        "pos_emb": nrm((S, HIDDEN)),
        "type_emb": nrm((1, HIDDEN)),
        "emb_ln_g": jnp.ones((1, HIDDEN), jnp.float32),
        "emb_ln_b": jnp.zeros((1, HIDDEN), jnp.float32),
        # per-layer weights pre-stacked; per-head Q/K/V and output-projection blocks
        # live on LEADING axes so the kernel never slices along the lane dim.
        "wq": nrm((L, NHEAD, HIDDEN, HEAD_DIM)),
        "bq": jnp.zeros((L, NHEAD, 1, HEAD_DIM), jnp.float32),
        "wk": nrm((L, NHEAD, HIDDEN, HEAD_DIM)),
        "bk": jnp.zeros((L, NHEAD, 1, HEAD_DIM), jnp.float32),
        "wv": nrm((L, NHEAD, HIDDEN, HEAD_DIM)),
        "bv": jnp.zeros((L, NHEAD, 1, HEAD_DIM), jnp.float32),
        "wo": nrm((L, NHEAD, HEAD_DIM, HIDDEN)),
        "bo": jnp.zeros((L, 1, HIDDEN), jnp.float32),
        "ln1_g": jnp.ones((L, 1, HIDDEN), jnp.float32),
        "ln1_b": jnp.zeros((L, 1, HIDDEN), jnp.float32),
        "w1": nrm((L, HIDDEN, FFN)),
        "b1": jnp.zeros((L, 1, FFN), jnp.float32),
        "w2": nrm((L, FFN, HIDDEN)),
        "b2": jnp.zeros((L, 1, HIDDEN), jnp.float32),
        "ln2_g": jnp.ones((L, 1, HIDDEN), jnp.float32),
        "ln2_b": jnp.zeros((L, 1, HIDDEN), jnp.float32),
        "mlm_dense_w": nrm((HIDDEN, HIDDEN)),
        "mlm_dense_b": jnp.zeros((1, HIDDEN), jnp.float32),
        "mlm_ln_g": jnp.ones((1, HIDDEN), jnp.float32),
        "mlm_ln_b": jnp.zeros((1, HIDDEN), jnp.float32),
        "mlm_bias": jnp.zeros((1, VOCAB), jnp.float32),
    }


# ---------------- forward (mirrors SequenceExpert.forward after tokenization) ----------------
def sequence_expert_forward(params, input_ids, attention_mask, output_hidden_states=True):
    Bx, Sx = input_ids.shape
    R = Bx * Sx
    L = NLAYERS

    # fold batch into the row (sublane) axis: one (B*S, H) tile, one grid step.
    ids = input_ids.reshape(R, 1).astype(jnp.int32)
    ptemb = jnp.tile(params["pos_emb"] + params["type_emb"], (Bx, 1))            # (R, H)
    # TODO(synk): token_type_ids assumed all zeros (single segment), as in the original usage.

    # precomputed additive attention bias: block-diagonal over batch AND key-padding mask
    batch_idx = jnp.repeat(jnp.arange(Bx, dtype=jnp.int32), Sx)                  # (R,)
    same_batch = batch_idx[:, None] == batch_idx[None, :]
    key_ok = attention_mask.reshape(R).astype(bool)
    attn_bias = jnp.where(jnp.logical_and(same_batch, key_ok[None, :]),
                          0.0, NEG).astype(jnp.float32)                          # (R, R)

    inputs = (ids, ptemb, attn_bias,
              params["emb_ln_g"], params["emb_ln_b"],
              params["wq"], params["bq"], params["wk"], params["bk"],
              params["wv"], params["bv"], params["wo"], params["bo"],
              params["ln1_g"], params["ln1_b"],
              params["w1"], params["b1"], params["w2"], params["b2"],
              params["ln2_g"], params["ln2_b"],
              params["mlm_dense_w"], params["mlm_dense_b"],
              params["mlm_ln_g"], params["mlm_ln_b"],
              params["word_emb"], params["mlm_bias"])

    def _full(shape):
        nd = len(shape)
        return pl.BlockSpec(shape, lambda i, nd=nd: (0,) * nd)

    in_specs = [_full(a.shape) for a in inputs]

    out_shapes = [jax.ShapeDtypeStruct((R, VOCAB), jnp.float32)]
    out_specs = [_full((R, VOCAB))]
    if output_hidden_states:
        out_shapes.append(jax.ShapeDtypeStruct((L + 1, R, HIDDEN), jnp.float32))
        out_specs.append(_full((L + 1, R, HIDDEN)))

    # advisory cost hint for XLA scheduling around the custom call
    flops_layer = (2 * R * HIDDEN * HIDDEN * 3            # Q/K/V projections
                   + 2 * NHEAD * R * R * HEAD_DIM * 2     # scores + context
                   + 2 * R * HIDDEN * HIDDEN              # output projection
                   + 2 * R * HIDDEN * FFN * 2)            # FFN up + down
    flops = (2 * R * VOCAB * HIDDEN                       # one-hot embedding matmul
             + L * flops_layer
             + 2 * R * HIDDEN * HIDDEN                    # MLM dense
             + 2 * R * HIDDEN * VOCAB)                    # tied decoder
    transcendentals = L * (NHEAD * R * R + R * FFN) + R * HIDDEN
    bytes_accessed = sum(a.size * a.dtype.itemsize for a in inputs)
    bytes_accessed += sum(math.prod(s.shape) * 4 for s in out_shapes)

    result = pl.pallas_call(
        _make_fused_kernel(R, output_hidden_states),
        grid=(1,),                                         # single fat step (whole batch)
        in_specs=in_specs,
        out_specs=tuple(out_specs),
        out_shape=tuple(out_shapes),
        compiler_params=pltpu.CompilerParams(dimension_semantics=("arbitrary",)),
        cost_estimate=pl.CostEstimate(flops=flops,
                                      transcendentals=transcendentals,
                                      bytes_accessed=bytes_accessed),
    )(*inputs)

    logits = result[0].reshape(Bx, Sx, VOCAB)
    if output_hidden_states:
        hid = result[1].reshape(L + 1, Bx, Sx, HIDDEN)
        return {"logits": logits,
                "hidden_states": tuple(hid[i] for i in range(L + 1))}
    return {"logits": logits}


if __name__ == "__main__":
    key = jax.random.PRNGKey(0)
    kp, kid = jax.random.split(key)
    params = init_params(kp)

    # TODO(synk): AutoTokenizer (string -> ids, padding/truncation, decode) is pure
    # string processing with no Pallas equivalent; we start from deterministic token ids.
    input_ids = jax.random.randint(kid, (B, S), 0, VOCAB, dtype=jnp.int32)
    attention_mask = jnp.ones((B, S), jnp.int32).at[1, S - 2:].set(0)     # pad last 2 of row 1

    fwd = jax.jit(functools.partial(sequence_expert_forward, output_hidden_states=True))
    out = fwd(params, input_ids, attention_mask)
    jax.block_until_ready(out)

    assert out["logits"].shape == (B, S, VOCAB)
    assert len(out["hidden_states"]) == NLAYERS + 1
    assert out["hidden_states"][0].shape == (B, S, HIDDEN)
    print("KERNEL_OK")
</pallas_src>

<mosaic_0001>
module attributes {stable_mosaic.version = 11 : i64} {
  func.func @kernel(%arg0: i32, %arg1: memref<16x1xi32, #tpu.memory_space<vmem>>, %arg2: memref<16x32xf32, #tpu.memory_space<vmem>>, %arg3: memref<16x16xf32, #tpu.memory_space<vmem>>, %arg4: memref<1x32xf32, #tpu.memory_space<vmem>>, %arg5: memref<1x32xf32, #tpu.memory_space<vmem>>, %arg6: memref<2x2x32x16xf32, #tpu.memory_space<vmem>>, %arg7: memref<2x2x1x16xf32, #tpu.memory_space<vmem>>, %arg8: memref<2x2x32x16xf32, #tpu.memory_space<vmem>>, %arg9: memref<2x2x1x16xf32, #tpu.memory_space<vmem>>, %arg10: memref<2x2x32x16xf32, #tpu.memory_space<vmem>>, %arg11: memref<2x2x1x16xf32, #tpu.memory_space<vmem>>, %arg12: memref<2x2x16x32xf32, #tpu.memory_space<vmem>>, %arg13: memref<2x1x32xf32, #tpu.memory_space<vmem>>, %arg14: memref<2x1x32xf32, #tpu.memory_space<vmem>>, %arg15: memref<2x1x32xf32, #tpu.memory_space<vmem>>, %arg16: memref<2x32x64xf32, #tpu.memory_space<vmem>>, %arg17: memref<2x1x64xf32, #tpu.memory_space<vmem>>, %arg18: memref<2x64x32xf32, #tpu.memory_space<vmem>>, %arg19: memref<2x1x32xf32, #tpu.memory_space<vmem>>, %arg20: memref<2x1x32xf32, #tpu.memory_space<vmem>>, %arg21: memref<2x1x32xf32, #tpu.memory_space<vmem>>, %arg22: memref<32x32xf32, #tpu.memory_space<vmem>>, %arg23: memref<1x32xf32, #tpu.memory_space<vmem>>, %arg24: memref<1x32xf32, #tpu.memory_space<vmem>>, %arg25: memref<1x32xf32, #tpu.memory_space<vmem>>, %arg26: memref<128x32xf32, #tpu.memory_space<vmem>>, %arg27: memref<1x128xf32, #tpu.memory_space<vmem>>, %arg28: memref<16x128xf32, #tpu.memory_space<vmem>>, %arg29: memref<3x16x32xf32, #tpu.memory_space<vmem>>) attributes {dimension_semantics = [#tpu.dimension_semantics<arbitrary>], iteration_bounds = array<i64: 1>, scalar_prefetch = 0 : i64, scratch_operands = 0 : i64, tpu.core_type = #tpu.core_type<tc>, window_params = [{pipeline_mode = #tpu.pipeline_mode<synchronous>, transform_indices = @transform_0, window_bounds = array<i64: 16, 1>}, {pipeline_mode = #tpu.pipeline_mode<synchronous>, transform_indices = @transform_1, window_bounds = array<i64: 16, 32>}, {pipeline_mode = #tpu.pipeline_mode<synchronous>, transform_indices = @transform_2, window_bounds = array<i64: 16, 16>}, {pipeline_mode = #tpu.pipeline_mode<synchronous>, transform_indices = @transform_3, window_bounds = array<i64: 1, 32>}, {pipeline_mode = #tpu.pipeline_mode<synchronous>, transform_indices = @transform_4, window_bounds = array<i64: 1, 32>}, {pipeline_mode = #tpu.pipeline_mode<synchronous>, transform_indices = @transform_5, window_bounds = array<i64: 2, 2, 32, 16>}, {pipeline_mode = #tpu.pipeline_mode<synchronous>, transform_indices = @transform_6, window_bounds = array<i64: 2, 2, 1, 16>}, {pipeline_mode = #tpu.pipeline_mode<synchronous>, transform_indices = @transform_7, window_bounds = array<i64: 2, 2, 32, 16>}, {pipeline_mode = #tpu.pipeline_mode<synchronous>, transform_indices = @transform_8, window_bounds = array<i64: 2, 2, 1, 16>}, {pipeline_mode = #tpu.pipeline_mode<synchronous>, transform_indices = @transform_9, window_bounds = array<i64: 2, 2, 32, 16>}, {pipeline_mode = #tpu.pipeline_mode<synchronous>, transform_indices = @transform_10, window_bounds = array<i64: 2, 2, 1, 16>}, {pipeline_mode = #tpu.pipeline_mode<synchronous>, transform_indices = @transform_11, window_bounds = array<i64: 2, 2, 16, 32>}, {pipeline_mode = #tpu.pipeline_mode<synchronous>, transform_indices = @transform_12, window_bounds = array<i64: 2, 1, 32>}, {pipeline_mode = #tpu.pipeline_mode<synchronous>, transform_indices = @transform_13, window_bounds = array<i64: 2, 1, 32>}, {pipeline_mode = #tpu.pipeline_mode<synchronous>, transform_indices = @transform_14, window_bounds = array<i64: 2, 1, 32>}, {pipeline_mode = #tpu.pipeline_mode<synchronous>, transform_indices = @transform_15, window_bounds = array<i64: 2, 32, 64>}, {pipeline_mode = #tpu.pipeline_mode<synchronous>, transform_indices = @transform_16, window_bounds = array<i64: 2, 1, 64>}, {pipeline_mode = #tpu.pipeline_mode<synchronous>, transform_indices = @transform_17, window_bounds = array<i64: 2, 64, 32>}, {pipeline_mode = #tpu.pipeline_mode<synchronous>, transform_indices = @transform_18, window_bounds = array<i64: 2, 1, 32>}, {pipeline_mode = #tpu.pipeline_mode<synchronous>, transform_indices = @transform_19, window_bounds = array<i64: 2, 1, 32>}, {pipeline_mode = #tpu.pipeline_mode<synchronous>, transform_indices = @transform_20, window_bounds = array<i64: 2, 1, 32>}, {pipeline_mode = #tpu.pipeline_mode<synchronous>, transform_indices = @transform_21, window_bounds = array<i64: 32, 32>}, {pipeline_mode = #tpu.pipeline_mode<synchronous>, transform_indices = @transform_22, window_bounds = array<i64: 1, 32>}, {pipeline_mode = #tpu.pipeline_mode<synchronous>, transform_indices = @transform_23, window_bounds = array<i64: 1, 32>}, {pipeline_mode = #tpu.pipeline_mode<synchronous>, transform_indices = @transform_24, window_bounds = array<i64: 1, 32>}, {pipeline_mode = #tpu.pipeline_mode<synchronous>, transform_indices = @transform_25, window_bounds = array<i64: 128, 32>}, {pipeline_mode = #tpu.pipeline_mode<synchronous>, transform_indices = @transform_26, window_bounds = array<i64: 1, 128>}, {pipeline_mode = #tpu.pipeline_mode<synchronous>, transform_indices = @transform_27, window_bounds = array<i64: 16, 128>}, {pipeline_mode = #tpu.pipeline_mode<synchronous>, transform_indices = @transform_28, window_bounds = array<i64: 3, 16, 32>}]} {
    %c0 = arith.constant 0 : index
    %c0_0 = arith.constant 0 : index
    %0 = vector.load %arg1[%c0, %c0_0] : memref<16x1xi32, #tpu.memory_space<vmem>>, vector<16x1xi32>
    %1 = tpu.iota {dimensions = array<i32: 1>} : vector<16x128xi32>
    %2 = vector.broadcast %0 : vector<16x1xi32> to vector<16x128xi32>
    %3 = arith.cmpi eq, %1, %2 : vector<16x128xi32>
    %4 = arith.extui %3 : vector<16x128xi1> to vector<16x128xi32>
    %5 = arith.sitofp %4 : vector<16x128xi32> to vector<16x128xf32>
    %c0_1 = arith.constant 0 : index
    %c0_2 = arith.constant 0 : index
    %6 = vector.load %arg26[%c0_1, %c0_2] : memref<128x32xf32, #tpu.memory_space<vmem>>, vector<128x32xf32>
    %cst = arith.constant dense<0.000000e+00> : vector<16x32xf32>
    %7 = tpu.matmul %5, %6, %cst {dimension_numbers = #tpu.dot_dimension_numbers<[1], [0], [0], [1], [0, 0, 1, 1], [], []>} : vector<16x128xf32>, vector<128x32xf32>, vector<16x32xf32> -> vector<16x32xf32>
    %c0_3 = arith.constant 0 : index
    %c0_4 = arith.constant 0 : index
    %8 = vector.load %arg2[%c0_3, %c0_4] : memref<16x32xf32, #tpu.memory_space<vmem>>, vector<16x32xf32>
    %9 = arith.addf %7, %8 : vector<16x32xf32>
    %c0_5 = arith.constant 0 : index
    %c0_6 = arith.constant 0 : index
    %10 = vector.load %arg4[%c0_5, %c0_6] : memref<1x32xf32, #tpu.memory_space<vmem>>, vector<1x32xf32>
    %c0_7 = arith.constant 0 : index
    %c0_8 = arith.constant 0 : index
    %11 = vector.load %arg5[%c0_7, %c0_8] : memref<1x32xf32, #tpu.memory_space<vmem>>, vector<1x32xf32>
    %cst_9 = arith.constant dense<0.000000e+00> : vector<16xf32>
    %12 = vector.multi_reduction <add>, %9, %cst_9 [1] : vector<16x32xf32> to vector<16xf32>
    %13 = vector.shape_cast %12 : vector<16xf32> to vector<16x1xf32>
    %cst_10 = arith.constant 3.200000e+01 : f32
    %14 = vector.broadcast %cst_10 : f32 to vector<16x1xf32>
    %15 = arith.divf %13, %14 : vector<16x1xf32>
    %16 = vector.broadcast %15 : vector<16x1xf32> to vector<16x32xf32>
    %17 = arith.subf %9, %16 : vector<16x32xf32>
    %18 = arith.mulf %17, %17 : vector<16x32xf32>
    %cst_11 = arith.constant dense<0.000000e+00> : vector<16xf32>
    %19 = vector.multi_reduction <add>, %18, %cst_11 [1] : vector<16x32xf32> to vector<16xf32>
    %20 = vector.shape_cast %19 : vector<16xf32> to vector<16x1xf32>
    %cst_12 = arith.constant 3.200000e+01 : f32
    %21 = vector.broadcast %cst_12 : f32 to vector<16x1xf32>
    %22 = arith.divf %20, %21 : vector<16x1xf32>
    %cst_13 = arith.constant 9.99999996E-13 : f32
    %23 = vector.broadcast %cst_13 : f32 to vector<16x1xf32>
    %24 = arith.addf %22, %23 : vector<16x1xf32>
    %25 = math.rsqrt %24 : vector<16x1xf32>
    %26 = vector.broadcast %25 : vector<16x1xf32> to vector<16x32xf32>
    %27 = arith.mulf %17, %26 : vector<16x32xf32>
    %28 = vector.broadcast %10 : vector<1x32xf32> to vector<16x32xf32>
    %29 = arith.mulf %27, %28 : vector<16x32xf32>
    %30 = vector.broadcast %11 : vector<1x32xf32> to vector<16x32xf32>
    %31 = arith.addf %29, %30 : vector<16x32xf32>
    %c0_14 = arith.constant 0 : index
    %c0_15 = arith.constant 0 : index
    %c0_16 = arith.constant 0 : index
    %32 = vector.load %arg29[%c0_14, %c0_15, %c0_16] : memref<3x16x32xf32, #tpu.memory_space<vmem>>, vector<1x16x32xf32>
    %33 = vector.shape_cast %32 : vector<1x16x32xf32> to vector<16x32xf32>
    %34 = vector.shape_cast %31 : vector<16x32xf32> to vector<1x16x32xf32>
    tpu.vector_store %arg29[%c0_14, %c0_15, %c0_16], %34 {strides = array<i32>} : memref<3x16x32xf32, #tpu.memory_space<vmem>>, vector<1x16x32xf32>,
    %c0_17 = arith.constant 0 : index
    %c0_18 = arith.constant 0 : index
    %35 = vector.load %arg3[%c0_17, %c0_18] : memref<16x16xf32, #tpu.memory_space<vmem>>, vector<16x16xf32>
    %c0_19 = arith.constant 0 : index
    %c0_20 = arith.constant 0 : index
    %c0_21 = arith.constant 0 : index
    %c0_22 = arith.constant 0 : index
    %36 = vector.load %arg6[%c0_19, %c0_20, %c0_21, %c0_22] : memref<2x2x32x16xf32, #tpu.memory_space<vmem>>, vector<1x1x32x16xf32>
    %37 = vector.shape_cast %36 : vector<1x1x32x16xf32> to vector<32x16xf32>
    %cst_23 = arith.constant dense<0.000000e+00> : vector<16x16xf32>
    %38 = tpu.matmul %31, %37, %cst_23 {dimension_numbers = #tpu.dot_dimension_numbers<[1], [0], [0], [1], [0, 0, 1, 1], [], []>} : vector<16x32xf32>, vector<32x16xf32>, vector<16x16xf32> -> vector<16x16xf32>
    %c0_24 = arith.constant 0 : index
    %c0_25 = arith.constant 0 : index
    %c0_26 = arith.constant 0 : index
    %c0_27 = arith.constant 0 : index
    %39 = vector.load %arg7[%c0_24, %c0_25, %c0_26, %c0_27] : memref<2x2x1x16xf32, #tpu.memory_space<vmem>>, vector<1x1x1x16xf32>
    %40 = vector.shape_cast %39 : vector<1x1x1x16xf32> to vector<1x16xf32>
    %41 = vector.broadcast %40 : vector<1x16xf32> to vector<16x16xf32>
    %42 = arith.addf %38, %41 : vector<16x16xf32>
    %c0_28 = arith.constant 0 : index
    %c0_29 = arith.constant 0 : index
    %c0_30 = arith.constant 0 : index
    %c0_31 = arith.constant 0 : index
    %43 = vector.load %arg8[%c0_28, %c0_29, %c0_30, %c0_31] : memref<2x2x32x16xf32, #tpu.memory_space<vmem>>, vector<1x1x32x16xf32>
    %44 = vector.shape_cast %43 : vector<1x1x32x16xf32> to vector<32x16xf32>
    %cst_32 = arith.constant dense<0.000000e+00> : vector<16x16xf32>
    %45 = tpu.matmul %31, %44, %cst_32 {dimension_numbers = #tpu.dot_dimension_numbers<[1], [0], [0], [1], [0, 0, 1, 1], [], []>} : vector<16x32xf32>, vector<32x16xf32>, vector<16x16xf32> -> vector<16x16xf32>
    %c0_33 = arith.constant 0 : index
    %c0_34 = arith.constant 0 : index
    %c0_35 = arith.constant 0 : index
    %c0_36 = arith.constant 0 : index
    %46 = vector.load %arg9[%c0_33, %c0_34, %c0_35, %c0_36] : memref<2x2x1x16xf32, #tpu.memory_space<vmem>>, vector<1x1x1x16xf32>
    %47 = vector.shape_cast %46 : vector<1x1x1x16xf32> to vector<1x16xf32>
    %48 = vector.broadcast %47 : vector<1x16xf32> to vector<16x16xf32>
    %49 = arith.addf %45, %48 : vector<16x16xf32>
    %c0_37 = arith.constant 0 : index
    %c0_38 = arith.constant 0 : index
    %c0_39 = arith.constant 0 : index
    %c0_40 = arith.constant 0 : index
    %50 = vector.load %arg10[%c0_37, %c0_38, %c0_39, %c0_40] : memref<2x2x32x16xf32, #tpu.memory_space<vmem>>, vector<1x1x32x16xf32>
    %51 = vector.shape_cast %50 : vector<1x1x32x16xf32> to vector<32x16xf32>
    %cst_41 = arith.constant dense<0.000000e+00> : vector<16x16xf32>
    %52 = tpu.matmul %31, %51, %cst_41 {dimension_numbers = #tpu.dot_dimension_numbers<[1], [0], [0], [1], [0, 0, 1, 1], [], []>} : vector<16x32xf32>, vector<32x16xf32>, vector<16x16xf32> -> vector<16x16xf32>
    %c0_42 = arith.constant 0 : index
    %c0_43 = arith.constant 0 : index
    %c0_44 = arith.constant 0 : index
    %c0_45 = arith.constant 0 : index
    %53 = vector.load %arg11[%c0_42, %c0_43, %c0_44, %c0_45] : memref<2x2x1x16xf32, #tpu.memory_space<vmem>>, vector<1x1x1x16xf32>
    %54 = vector.shape_cast %53 : vector<1x1x1x16xf32> to vector<1x16xf32>
    %55 = vector.broadcast %54 : vector<1x16xf32> to vector<16x16xf32>
    %56 = arith.addf %52, %55 : vector<16x16xf32>
    %cst_46 = arith.constant dense<0.000000e+00> : vector<16x16xf32>
    %57 = tpu.matmul %42, %49, %cst_46 {dimension_numbers = #tpu.dot_dimension_numbers<[1], [1], [0], [0], [0, 0, 1, 0], [], []>} : vector<16x16xf32>, vector<16x16xf32>, vector<16x16xf32> -> vector<16x16xf32>
    %cst_47 = arith.constant 2.500000e-01 : f32
    %58 = vector.broadcast %cst_47 : f32 to vector<16x16xf32>
    %59 = arith.mulf %57, %58 : vector<16x16xf32>
    %60 = arith.addf %59, %35 : vector<16x16xf32>
    %cst_48 = arith.constant dense<0xFF800000> : vector<16xf32>
    %61 = vector.multi_reduction <maximumf>, %60, %cst_48 [1] : vector<16x16xf32> to vector<16xf32>
    %62 = vector.shape_cast %61 : vector<16xf32> to vector<16x1xf32>
    %63 = vector.broadcast %62 : vector<16x1xf32> to vector<16x16xf32>
    %64 = arith.subf %60, %63 : vector<16x16xf32>
    %65 = math.exp %64 : vector<16x16xf32>
    %cst_49 = arith.constant dense<0.000000e+00> : vector<16xf32>
    %66 = vector.multi_reduction <add>, %65, %cst_49 [1] : vector<16x16xf32> to vector<16xf32>
    %67 = vector.shape_cast %66 : vector<16xf32> to vector<16x1xf32>
    %68 = tpu.reciprocal %67 {approx = true} : vector<16x1xf32> -> vector<16x1xf32>
    %69 = vector.broadcast %68 : vector<16x1xf32> to vector<16x16xf32>
    %70 = arith.mulf %65, %69 : vector<16x16xf32>
    %cst_50 = arith.constant dense<0.000000e+00> : vector<16x16xf32>
    %71 = tpu.matmul %70, %56, %cst_50 {dimension_numbers = #tpu.dot_dimension_numbers<[1], [0], [0], [1], [0, 0, 1, 1], [], []>} : vector<16x16xf32>, vector<16x16xf32>, vector<16x16xf32> -> vector<16x16xf32>
    %c0_51 = arith.constant 0 : index
    %c0_52 = arith.constant 0 : index
    %c0_53 = arith.constant 0 : index
    %c0_54 = arith.constant 0 : index
    %72 = vector.load %arg12[%c0_51, %c0_52, %c0_53, %c0_54] : memref<2x2x16x32xf32, #tpu.memory_space<vmem>>, vector<1x1x16x32xf32>
    %73 = vector.shape_cast %72 : vector<1x1x16x32xf32> to vector<16x32xf32>
    %cst_55 = arith.constant dense<0.000000e+00> : vector<16x32xf32>
    %74 = tpu.matmul %71, %73, %cst_55 {dimension_numbers = #tpu.dot_dimension_numbers<[1], [0], [0], [1], [0, 0, 1, 1], [], []>} : vector<16x16xf32>, vector<16x32xf32>, vector<16x32xf32> -> vector<16x32xf32>
    %c0_56 = arith.constant 0 : index
    %c1 = arith.constant 1 : index
    %c0_57 = arith.constant 0 : index
    %c0_58 = arith.constant 0 : index
    %75 = vector.load %arg6[%c0_56, %c1, %c0_57, %c0_58] : memref<2x2x32x16xf32, #tpu.memory_space<vmem>>, vector<1x1x32x16xf32>
    %76 = vector.shape_cast %75 : vector<1x1x32x16xf32> to vector<32x16xf32>
    %cst_59 = arith.constant dense<0.000000e+00> : vector<16x16xf32>
    %77 = tpu.matmul %31, %76, %cst_59 {dimension_numbers = #tpu.dot_dimension_numbers<[1], [0], [0], [1], [0, 0, 1, 1], [], []>} : vector<16x32xf32>, vector<32x16xf32>, vector<16x16xf32> -> vector<16x16xf32>
    %c0_60 = arith.constant 0 : index
    %c1_61 = arith.constant 1 : index
    %c0_62 = arith.constant 0 : index
    %c0_63 = arith.constant 0 : index
    %78 = vector.load %arg7[%c0_60, %c1_61, %c0_62, %c0_63] : memref<2x2x1x16xf32, #tpu.memory_space<vmem>>, vector<1x1x1x16xf32>
    %79 = vector.shape_cast %78 : vector<1x1x1x16xf32> to vector<1x16xf32>
    %80 = vector.broadcast %79 : vector<1x16xf32> to vector<16x16xf32>
    %81 = arith.addf %77, %80 : vector<16x16xf32>
    %c0_64 = arith.constant 0 : index
    %c1_65 = arith.constant 1 : index
    %c0_66 = arith.constant 0 : index
    %c0_67 = arith.constant 0 : index
    %82 = vector.load %arg8[%c0_64, %c1_65, %c0_66, %c0_67] : memref<2x2x32x16xf32, #tpu.memory_space<vmem>>, vector<1x1x32x16xf32>
    %83 = vector.shape_cast %82 : vector<1x1x32x16xf32> to vector<32x16xf32>
    %cst_68 = arith.constant dense<0.000000e+00> : vector<16x16xf32>
    %84 = tpu.matmul %31, %83, %cst_68 {dimension_numbers = #tpu.dot_dimension_numbers<[1], [0], [0], [1], [0, 0, 1, 1], [], []>} : vector<16x32xf32>, vector<32x16xf32>, vector<16x16xf32> -> vector<16x16xf32>
    %c0_69 = arith.constant 0 : index
    %c1_70 = arith.constant 1 : index
    %c0_71 = arith.constant 0 : index
    %c0_72 = arith.constant 0 : index
    %85 = vector.load %arg9[%c0_69, %c1_70, %c0_71, %c0_72] : memref<2x2x1x16xf32, #tpu.memory_space<vmem>>, vector<1x1x1x16xf32>
    %86 = vector.shape_cast %85 : vector<1x1x1x16xf32> to vector<1x16xf32>
    %87 = vector.broadcast %86 : vector<1x16xf32> to vector<16x16xf32>
    %88 = arith.addf %84, %87 : vector<16x16xf32>
    %c0_73 = arith.constant 0 : index
    %c1_74 = arith.constant 1 : index
    %c0_75 = arith.constant 0 : index
    %c0_76 = arith.constant 0 : index
    %89 = vector.load %arg10[%c0_73, %c1_74, %c0_75, %c0_76] : memref<2x2x32x16xf32, #tpu.memory_space<vmem>>, vector<1x1x32x16xf32>
    %90 = vector.shape_cast %89 : vector<1x1x32x16xf32> to vector<32x16xf32>
    %cst_77 = arith.constant dense<0.000000e+00> : vector<16x16xf32>
    %91 = tpu.matmul %31, %90, %cst_77 {dimension_numbers = #tpu.dot_dimension_numbers<[1], [0], [0], [1], [0, 0, 1, 1], [], []>} : vector<16x32xf32>, vector<32x16xf32>, vector<16x16xf32> -> vector<16x16xf32>
    %c0_78 = arith.constant 0 : index
    %c1_79 = arith.constant 1 : index
    %c0_80 = arith.constant 0 : index
    %c0_81 = arith.constant 0 : index
    %92 = vector.load %arg11[%c0_78, %c1_79, %c0_80, %c0_81] : memref<2x2x1x16xf32, #tpu.memory_space<vmem>>, vector<1x1x1x16xf32>
    %93 = vector.shape_cast %92 : vector<1x1x1x16xf32> to vector<1x16xf32>
    %94 = vector.broadcast %93 : vector<1x16xf32> to vector<16x16xf32>
    %95 = arith.addf %91, %94 : vector<16x16xf32>
    %cst_82 = arith.constant dense<0.000000e+00> : vector<16x16xf32>
    %96 = tpu.matmul %81, %88, %cst_82 {dimension_numbers = #tpu.dot_dimension_numbers<[1], [1], [0], [0], [0, 0, 1, 0], [], []>} : vector<16x16xf32>, vector<16x16xf32>, vector<16x16xf32> -> vector<16x16xf32>
    %cst_83 = arith.constant 2.500000e-01 : f32
    %97 = vector.broadcast %cst_83 : f32 to vector<16x16xf32>
    %98 = arith.mulf %96, %97 : vector<16x16xf32>
    %99 = arith.addf %98, %35 : vector<16x16xf32>
    %cst_84 = arith.constant dense<0xFF800000> : vector<16xf32>
    %100 = vector.multi_reduction <maximumf>, %99, %cst_84 [1] : vector<16x16xf32> to vector<16xf32>
    %101 = vector.shape_cast %100 : vector<16xf32> to vector<16x1xf32>
    %102 = vector.broadcast %101 : vector<16x1xf32> to vector<16x16xf32>
    %103 = arith.subf %99, %102 : vector<16x16xf32>
    %104 = math.exp %103 : vector<16x16xf32>
    %cst_85 = arith.constant dense<0.000000e+00> : vector<16xf32>
    %105 = vector.multi_reduction <add>, %104, %cst_85 [1] : vector<16x16xf32> to vector<16xf32>
    %106 = vector.shape_cast %105 : vector<16xf32> to vector<16x1xf32>
    %107 = tpu.reciprocal %106 {approx = true} : vector<16x1xf32> -> vector<16x1xf32>
    %108 = vector.broadcast %107 : vector<16x1xf32> to vector<16x16xf32>
    %109 = arith.mulf %104, %108 : vector<16x16xf32>
    %cst_86 = arith.constant dense<0.000000e+00> : vector<16x16xf32>
    %110 = tpu.matmul %109, %95, %cst_86 {dimension_numbers = #tpu.dot_dimension_numbers<[1], [0], [0], [1], [0, 0, 1, 1], [], []>} : vector<16x16xf32>, vector<16x16xf32>, vector<16x16xf32> -> vector<16x16xf32>
    %c0_87 = arith.constant 0 : index
    %c1_88 = arith.constant 1 : index
    %c0_89 = arith.constant 0 : index
    %c0_90 = arith.constant 0 : index
    %111 = vector.load %arg12[%c0_87, %c1_88, %c0_89, %c0_90] : memref<2x2x16x32xf32, #tpu.memory_space<vmem>>, vector<1x1x16x32xf32>
    %112 = vector.shape_cast %111 : vector<1x1x16x32xf32> to vector<16x32xf32>
    %cst_91 = arith.constant dense<0.000000e+00> : vector<16x32xf32>
    %113 = tpu.matmul %110, %112, %cst_91 {dimension_numbers = #tpu.dot_dimension_numbers<[1], [0], [0], [1], [0, 0, 1, 1], [], []>} : vector<16x16xf32>, vector<16x32xf32>, vector<16x32xf32> -> vector<16x32xf32>
    %114 = arith.addf %74, %113 : vector<16x32xf32>
    %c0_92 = arith.constant 0 : index
    %c0_93 = arith.constant 0 : index
    %c0_94 = arith.constant 0 : index
    %115 = vector.load %arg13[%c0_92, %c0_93, %c0_94] : memref<2x1x32xf32, #tpu.memory_space<vmem>>, vector<1x1x32xf32>
    %116 = vector.shape_cast %115 : vector<1x1x32xf32> to vector<1x32xf32>
    %117 = vector.broadcast %116 : vector<1x32xf32> to vector<16x32xf32>
    %118 = arith.addf %114, %117 : vector<16x32xf32>
    %119 = arith.addf %31, %118 : vector<16x32xf32>
    %c0_95 = arith.constant 0 : index
    %c0_96 = arith.constant 0 : index
    %c0_97 = arith.constant 0 : index
    %120 = vector.load %arg14[%c0_95, %c0_96, %c0_97] : memref<2x1x32xf32, #tpu.memory_space<vmem>>, vector<1x1x32xf32>
    %121 = vector.shape_cast %120 : vector<1x1x32xf32> to vector<1x32xf32>
    %c0_98 = arith.constant 0 : index
    %c0_99 = arith.constant 0 : index
    %c0_100 = arith.constant 0 : index
    %122 = vector.load %arg15[%c0_98, %c0_99, %c0_100] : memref<2x1x32xf32, #tpu.memory_space<vmem>>, vector<1x1x32xf32>
    %123 = vector.shape_cast %122 : vector<1x1x32xf32> to vector<1x32xf32>
    %cst_101 = arith.constant dense<0.000000e+00> : vector<16xf32>
    %124 = vector.multi_reduction <add>, %119, %cst_101 [1] : vector<16x32xf32> to vector<16xf32>
    %125 = vector.shape_cast %124 : vector<16xf32> to vector<16x1xf32>
    %cst_102 = arith.constant 3.200000e+01 : f32
    %126 = vector.broadcast %cst_102 : f32 to vector<16x1xf32>
    %127 = arith.divf %125, %126 : vector<16x1xf32>
    %128 = vector.broadcast %127 : vector<16x1xf32> to vector<16x32xf32>
    %129 = arith.subf %119, %128 : vector<16x32xf32>
    %130 = arith.mulf %129, %129 : vector<16x32xf32>
    %cst_103 = arith.constant dense<0.000000e+00> : vector<16xf32>
    %131 = vector.multi_reduction <add>, %130, %cst_103 [1] : vector<16x32xf32> to vector<16xf32>
    %132 = vector.shape_cast %131 : vector<16xf32> to vector<16x1xf32>
    %cst_104 = arith.constant 3.200000e+01 : f32
    %133 = vector.broadcast %cst_104 : f32 to vector<16x1xf32>
    %134 = arith.divf %132, %133 : vector<16x1xf32>
    %cst_105 = arith.constant 9.99999996E-13 : f32
    %135 = vector.broadcast %cst_105 : f32 to vector<16x1xf32>
    %136 = arith.addf %134, %135 : vector<16x1xf32>
    %137 = math.rsqrt %136 : vector<16x1xf32>
    %138 = vector.broadcast %137 : vector<16x1xf32> to vector<16x32xf32>
    %139 = arith.mulf %129, %138 : vector<16x32xf32>
    %140 = vector.broadcast %121 : vector<1x32xf32> to vector<16x32xf32>
    %141 = arith.mulf %139, %140 : vector<16x32xf32>
    %142 = vector.broadcast %123 : vector<1x32xf32> to vector<16x32xf32>
    %143 = arith.addf %141, %142 : vector<16x32xf32>
    %c0_106 = arith.constant 0 : index
    %c0_107 = arith.constant 0 : index
    %c0_108 = arith.constant 0 : index
    %144 = vector.load %arg16[%c0_106, %c0_107, %c0_108] : memref<2x32x64xf32, #tpu.memory_space<vmem>>, vector<1x32x64xf32>
    %145 = vector.shape_cast %144 : vector<1x32x64xf32> to vector<32x64xf32>
    %cst_109 = arith.constant dense<0.000000e+00> : vector<16x64xf32>
    %146 = tpu.matmul %143, %145, %cst_109 {dimension_numbers = #tpu.dot_dimension_numbers<[1], [0], [0], [1], [0, 0, 1, 1], [], []>} : vector<16x32xf32>, vector<32x64xf32>, vector<16x64xf32> -> vector<16x64xf32>
    %c0_110 = arith.constant 0 : index
    %c0_111 = arith.constant 0 : index
    %c0_112 = arith.constant 0 : index
    %147 = vector.load %arg17[%c0_110, %c0_111, %c0_112] : memref<2x1x64xf32, #tpu.memory_space<vmem>>, vector<1x1x64xf32>
    %148 = vector.shape_cast %147 : vector<1x1x64xf32> to vector<1x64xf32>
    %149 = vector.broadcast %148 : vector<1x64xf32> to vector<16x64xf32>
    %150 = arith.addf %146, %149 : vector<16x64xf32>
    %cst_113 = arith.constant 5.000000e-01 : f32
    %151 = vector.broadcast %cst_113 : f32 to vector<16x64xf32>
    %152 = arith.mulf %151, %150 : vector<16x64xf32>
    %cst_114 = arith.constant 4.471500e-02 : f32
    %153 = vector.broadcast %cst_114 : f32 to vector<16x64xf32>
    %154 = arith.mulf %153, %150 : vector<16x64xf32>
    %155 = arith.mulf %154, %150 : vector<16x64xf32>
    %156 = arith.mulf %155, %150 : vector<16x64xf32>
    %157 = arith.addf %150, %156 : vector<16x64xf32>
    %cst_115 = arith.constant 0.797884583 : f32
    %158 = vector.broadcast %cst_115 : f32 to vector<16x64xf32>
    %159 = arith.mulf %158, %157 : vector<16x64xf32>
    %160 = math.tanh %159 : vector<16x64xf32>
    %cst_116 = arith.constant 1.000000e+00 : f32
    %161 = vector.broadcast %cst_116 : f32 to vector<16x64xf32>
    %162 = arith.addf %161, %160 : vector<16x64xf32>
    %163 = arith.mulf %152, %162 : vector<16x64xf32>
    %c0_117 = arith.constant 0 : index
    %c0_118 = arith.constant 0 : index
    %c0_119 = arith.constant 0 : index
    %164 = vector.load %arg18[%c0_117, %c0_118, %c0_119] : memref<2x64x32xf32, #tpu.memory_space<vmem>>, vector<1x64x32xf32>
    %165 = vector.shape_cast %164 : vector<1x64x32xf32> to vector<64x32xf32>
    %cst_120 = arith.constant dense<0.000000e+00> : vector<16x32xf32>
    %166 = tpu.matmul %163, %165, %cst_120 {dimension_numbers = #tpu.dot_dimension_numbers<[1], [0], [0], [1], [0, 0, 1, 1], [], []>} : vector<16x64xf32>, vector<64x32xf32>, vector<16x32xf32> -> vector<16x32xf32>
    %c0_121 = arith.constant 0 : index
    %c0_122 = arith.constant 0 : index
    %c0_123 = arith.constant 0 : index
    %167 = vector.load %arg19[%c0_121, %c0_122, %c0_123] : memref<2x1x32xf32, #tpu.memory_space<vmem>>, vector<1x1x32xf32>
    %168 = vector.shape_cast %167 : vector<1x1x32xf32> to vector<1x32xf32>
    %169 = vector.broadcast %168 : vector<1x32xf32> to vector<16x32xf32>
    %170 = arith.addf %166, %169 : vector<16x32xf32>
    %171 = arith.addf %143, %170 : vector<16x32xf32>
    %c0_124 = arith.constant 0 : index
    %c0_125 = arith.constant 0 : index
    %c0_126 = arith.constant 0 : index
    %172 = vector.load %arg20[%c0_124, %c0_125, %c0_126] : memref<2x1x32xf32, #tpu.memory_space<vmem>>, vector<1x1x32xf32>
    %173 = vector.shape_cast %172 : vector<1x1x32xf32> to vector<1x32xf32>
    %c0_127 = arith.constant 0 : index
    %c0_128 = arith.constant 0 : index
    %c0_129 = arith.constant 0 : index
    %174 = vector.load %arg21[%c0_127, %c0_128, %c0_129] : memref<2x1x32xf32, #tpu.memory_space<vmem>>, vector<1x1x32xf32>
    %175 = vector.shape_cast %174 : vector<1x1x32xf32> to vector<1x32xf32>
    %cst_130 = arith.constant dense<0.000000e+00> : vector<16xf32>
    %176 = vector.multi_reduction <add>, %171, %cst_130 [1] : vector<16x32xf32> to vector<16xf32>
    %177 = vector.shape_cast %176 : vector<16xf32> to vector<16x1xf32>
    %cst_131 = arith.constant 3.200000e+01 : f32
    %178 = vector.broadcast %cst_131 : f32 to vector<16x1xf32>
    %179 = arith.divf %177, %178 : vector<16x1xf32>
    %180 = vector.broadcast %179 : vector<16x1xf32> to vector<16x32xf32>
    %181 = arith.subf %171, %180 : vector<16x32xf32>
    %182 = arith.mulf %181, %181 : vector<16x32xf32>
    %cst_132 = arith.constant dense<0.000000e+00> : vector<16xf32>
    %183 = vector.multi_reduction <add>, %182, %cst_132 [1] : vector<16x32xf32> to vector<16xf32>
    %184 = vector.shape_cast %183 : vector<16xf32> to vector<16x1xf32>
    %cst_133 = arith.constant 3.200000e+01 : f32
    %185 = vector.broadcast %cst_133 : f32 to vector<16x1xf32>
    %186 = arith.divf %184, %185 : vector<16x1xf32>
    %cst_134 = arith.constant 9.99999996E-13 : f32
    %187 = vector.broadcast %cst_134 : f32 to vector<16x1xf32>
    %188 = arith.addf %186, %187 : vector<16x1xf32>
    %189 = math.rsqrt %188 : vector<16x1xf32>
    %190 = vector.broadcast %189 : vector<16x1xf32> to vector<16x32xf32>
    %191 = arith.mulf %181, %190 : vector<16x32xf32>
    %192 = vector.broadcast %173 : vector<1x32xf32> to vector<16x32xf32>
    %193 = arith.mulf %191, %192 : vector<16x32xf32>
    %194 = vector.broadcast %175 : vector<1x32xf32> to vector<16x32xf32>
    %195 = arith.addf %193, %194 : vector<16x32xf32>
    %c1_135 = arith.constant 1 : index
    %c0_136 = arith.constant 0 : index
    %c0_137 = arith.constant 0 : index
    %196 = vector.load %arg29[%c1_135, %c0_136, %c0_137] : memref<3x16x32xf32, #tpu.memory_space<vmem>>, vector<1x16x32xf32>
    %197 = vector.shape_cast %196 : vector<1x16x32xf32> to vector<16x32xf32>
    %198 = vector.shape_cast %195 : vector<16x32xf32> to vector<1x16x32xf32>
    tpu.vector_store %arg29[%c1_135, %c0_136, %c0_137], %198 {strides = array<i32>} : memref<3x16x32xf32, #tpu.memory_space<vmem>>, vector<1x16x32xf32>,
    %c1_138 = arith.constant 1 : index
    %c0_139 = arith.constant 0 : index
    %c0_140 = arith.constant 0 : index
    %c0_141 = arith.constant 0 : index
    %199 = vector.load %arg6[%c1_138, %c0_139, %c0_140, %c0_141] : memref<2x2x32x16xf32, #tpu.memory_space<vmem>>, vector<1x1x32x16xf32>
    %200 = vector.shape_cast %199 : vector<1x1x32x16xf32> to vector<32x16xf32>
    %cst_142 = arith.constant dense<0.000000e+00> : vector<16x16xf32>
    %201 = tpu.matmul %195, %200, %cst_142 {dimension_numbers = #tpu.dot_dimension_numbers<[1], [0], [0], [1], [0, 0, 1, 1], [], []>} : vector<16x32xf32>, vector<32x16xf32>, vector<16x16xf32> -> vector<16x16xf32>
    %c1_143 = arith.constant 1 : index
    %c0_144 = arith.constant 0 : index
    %c0_145 = arith.constant 0 : index
    %c0_146 = arith.constant 0 : index
    %202 = vector.load %arg7[%c1_143, %c0_144, %c0_145, %c0_146] : memref<2x2x1x16xf32, #tpu.memory_space<vmem>>, vector<1x1x1x16xf32>
    %203 = vector.shape_cast %202 : vector<1x1x1x16xf32> to vector<1x16xf32>
    %204 = vector.broadcast %203 : vector<1x16xf32> to vector<16x16xf32>
    %205 = arith.addf %201, %204 : vector<16x16xf32>
    %c1_147 = arith.constant 1 : index
    %c0_148 = arith.constant 0 : index
    %c0_149 = arith.constant 0 : index
    %c0_150 = arith.constant 0 : index
    %206 = vector.load %arg8[%c1_147, %c0_148, %c0_149, %c0_150] : memref<2x2x32x16xf32, #tpu.memory_space<vmem>>, vector<1x1x32x16xf32>
    %207 = vector.shape_cast %206 : vector<1x1x32x16xf32> to vector<32x16xf32>
    %cst_151 = arith.constant dense<0.000000e+00> : vector<16x16xf32>
    %208 = tpu.matmul %195, %207, %cst_151 {dimension_numbers = #tpu.dot_dimension_numbers<[1], [0], [0], [1], [0, 0, 1, 1], [], []>} : vector<16x32xf32>, vector<32x16xf32>, vector<16x16xf32> -> vector<16x16xf32>
    %c1_152 = arith.constant 1 : index
    %c0_153 = arith.constant 0 : index
    %c0_154 = arith.constant 0 : index
    %c0_155 = arith.constant 0 : index
    %209 = vector.load %arg9[%c1_152, %c0_153, %c0_154, %c0_155] : memref<2x2x1x16xf32, #tpu.memory_space<vmem>>, vector<1x1x1x16xf32>
    %210 = vector.shape_cast %209 : vector<1x1x1x16xf32> to vector<1x16xf32>
    %211 = vector.broadcast %210 : vector<1x16xf32> to vector<16x16xf32>
    %212 = arith.addf %208, %211 : vector<16x16xf32>
    %c1_156 = arith.constant 1 : index
    %c0_157 = arith.constant 0 : index
    %c0_158 = arith.constant 0 : index
    %c0_159 = arith.constant 0 : index
    %213 = vector.load %arg10[%c1_156, %c0_157, %c0_158, %c0_159] : memref<2x2x32x16xf32, #tpu.memory_space<vmem>>, vector<1x1x32x16xf32>
    %214 = vector.shape_cast %213 : vector<1x1x32x16xf32> to vector<32x16xf32>
    %cst_160 = arith.constant dense<0.000000e+00> : vector<16x16xf32>
    %215 = tpu.matmul %195, %214, %cst_160 {dimension_numbers = #tpu.dot_dimension_numbers<[1], [0], [0], [1], [0, 0, 1, 1], [], []>} : vector<16x32xf32>, vector<32x16xf32>, vector<16x16xf32> -> vector<16x16xf32>
    %c1_161 = arith.constant 1 : index
    %c0_162 = arith.constant 0 : index
    %c0_163 = arith.constant 0 : index
    %c0_164 = arith.constant 0 : index
    %216 = vector.load %arg11[%c1_161, %c0_162, %c0_163, %c0_164] : memref<2x2x1x16xf32, #tpu.memory_space<vmem>>, vector<1x1x1x16xf32>
    %217 = vector.shape_cast %216 : vector<1x1x1x16xf32> to vector<1x16xf32>
    %218 = vector.broadcast %217 : vector<1x16xf32> to vector<16x16xf32>
    %219 = arith.addf %215, %218 : vector<16x16xf32>
    %cst_165 = arith.constant dense<0.000000e+00> : vector<16x16xf32>
    %220 = tpu.matmul %205, %212, %cst_165 {dimension_numbers = #tpu.dot_dimension_numbers<[1], [1], [0], [0], [0, 0, 1, 0], [], []>} : vector<16x16xf32>, vector<16x16xf32>, vector<16x16xf32> -> vector<16x16xf32>
    %cst_166 = arith.constant 2.500000e-01 : f32
    %221 = vector.broadcast %cst_166 : f32 to vector<16x16xf32>
    %222 = arith.mulf %220, %221 : vector<16x16xf32>
    %223 = arith.addf %222, %35 : vector<16x16xf32>
    %cst_167 = arith.constant dense<0xFF800000> : vector<16xf32>
    %224 = vector.multi_reduction <maximumf>, %223, %cst_167 [1] : vector<16x16xf32> to vector<16xf32>
    %225 = vector.shape_cast %224 : vector<16xf32> to vector<16x1xf32>
    %226 = vector.broadcast %225 : vector<16x1xf32> to vector<16x16xf32>
    %227 = arith.subf %223, %226 : vector<16x16xf32>
    %228 = math.exp %227 : vector<16x16xf32>
    %cst_168 = arith.constant dense<0.000000e+00> : vector<16xf32>
    %229 = vector.multi_reduction <add>, %228, %cst_168 [1] : vector<16x16xf32> to vector<16xf32>
    %230 = vector.shape_cast %229 : vector<16xf32> to vector<16x1xf32>
    %231 = tpu.reciprocal %230 {approx = true} : vector<16x1xf32> -> vector<16x1xf32>
    %232 = vector.broadcast %231 : vector<16x1xf32> to vector<16x16xf32>
    %233 = arith.mulf %228, %232 : vector<16x16xf32>
    %cst_169 = arith.constant dense<0.000000e+00> : vector<16x16xf32>
    %234 = tpu.matmul %233, %219, %cst_169 {dimension_numbers = #tpu.dot_dimension_numbers<[1], [0], [0], [1], [0, 0, 1, 1], [], []>} : vector<16x16xf32>, vector<16x16xf32>, vector<16x16xf32> -> vector<16x16xf32>
    %c1_170 = arith.constant 1 : index
    %c0_171 = arith.constant 0 : index
    %c0_172 = arith.constant 0 : index
    %c0_173 = arith.constant 0 : index
    %235 = vector.load %arg12[%c1_170, %c0_171, %c0_172, %c0_173] : memref<2x2x16x32xf32, #tpu.memory_space<vmem>>, vector<1x1x16x32xf32>
    %236 = vector.shape_cast %235 : vector<1x1x16x32xf32> to vector<16x32xf32>
    %cst_174 = arith.constant dense<0.000000e+00> : vector<16x32xf32>
    %237 = tpu.matmul %234, %236, %cst_174 {dimension_numbers = #tpu.dot_dimension_numbers<[1], [0], [0], [1], [0, 0, 1, 1], [], []>} : vector<16x16xf32>, vector<16x32xf32>, vector<16x32xf32> -> vector<16x32xf32>
    %c1_175 = arith.constant 1 : index
    %c1_176 = arith.constant 1 : index
    %c0_177 = arith.constant 0 : index
    %c0_178 = arith.constant 0 : index
    %238 = vector.load %arg6[%c1_175, %c1_176, %c0_177, %c0_178] : memref<2x2x32x16xf32, #tpu.memory_space<vmem>>, vector<1x1x32x16xf32>
    %239 = vector.shape_cast %238 : vector<1x1x32x16xf32> to vector<32x16xf32>
    %cst_179 = arith.constant dense<0.000000e+00> : vector<16x16xf32>
    %240 = tpu.matmul %195, %239, %cst_179 {dimension_numbers = #tpu.dot_dimension_numbers<[1], [0], [0], [1], [0, 0, 1, 1], [], []>} : vector<16x32xf32>, vector<32x16xf32>, vector<16x16xf32> -> vector<16x16xf32>
    %c1_180 = arith.constant 1 : index
    %c1_181 = arith.constant 1 : index
    %c0_182 = arith.constant 0 : index
    %c0_183 = arith.constant 0 : index
    %241 = vector.load %arg7[%c1_180, %c1_181, %c0_182, %c0_183] : memref<2x2x1x16xf32, #tpu.memory_space<vmem>>, vector<1x1x1x16xf32>
    %242 = vector.shape_cast %241 : vector<1x1x1x16xf32> to vector<1x16xf32>
    %243 = vector.broadcast %242 : vector<1x16xf32> to vector<16x16xf32>
    %244 = arith.addf %240, %243 : vector<16x16xf32>
    %c1_184 = arith.constant 1 : index
    %c1_185 = arith.constant 1 : index
    %c0_186 = arith.constant 0 : index
    %c0_187 = arith.constant 0 : index
    %245 = vector.load %arg8[%c1_184, %c1_185, %c0_186, %c0_187] : memref<2x2x32x16xf32, #tpu.memory_space<vmem>>, vector<1x1x32x16xf32>
    %246 = vector.shape_cast %245 : vector<1x1x32x16xf32> to vector<32x16xf32>
    %cst_188 = arith.constant dense<0.000000e+00> : vector<16x16xf32>
    %247 = tpu.matmul %195, %246, %cst_188 {dimension_numbers = #tpu.dot_dimension_numbers<[1], [0], [0], [1], [0, 0, 1, 1], [], []>} : vector<16x32xf32>, vector<32x16xf32>, vector<16x16xf32> -> vector<16x16xf32>
    %c1_189 = arith.constant 1 : index
    %c1_190 = arith.constant 1 : index
    %c0_191 = arith.constant 0 : index
    %c0_192 = arith.constant 0 : index
    %248 = vector.load %arg9[%c1_189, %c1_190, %c0_191, %c0_192] : memref<2x2x1x16xf32, #tpu.memory_space<vmem>>, vector<1x1x1x16xf32>
    %249 = vector.shape_cast %248 : vector<1x1x1x16xf32> to vector<1x16xf32>
    %250 = vector.broadcast %249 : vector<1x16xf32> to vector<16x16xf32>
    %251 = arith.addf %247, %250 : vector<16x16xf32>
    %c1_193 = arith.constant 1 : index
    %c1_194 = arith.constant 1 : index
    %c0_195 = arith.constant 0 : index
    %c0_196 = arith.constant 0 : index
    %252 = vector.load %arg10[%c1_193, %c1_194, %c0_195, %c0_196] : memref<2x2x32x16xf32, #tpu.memory_space<vmem>>, vector<1x1x32x16xf32>
    %253 = vector.shape_cast %252 : vector<1x1x32x16xf32> to vector<32x16xf32>
    %cst_197 = arith.constant dense<0.000000e+00> : vector<16x16xf32>
    %254 = tpu.matmul %195, %253, %cst_197 {dimension_numbers = #tpu.dot_dimension_numbers<[1], [0], [0], [1], [0, 0, 1, 1], [], []>} : vector<16x32xf32>, vector<32x16xf32>, vector<16x16xf32> -> vector<16x16xf32>
    %c1_198 = arith.constant 1 : index
    %c1_199 = arith.constant 1 : index
    %c0_200 = arith.constant 0 : index
    %c0_201 = arith.constant 0 : index
    %255 = vector.load %arg11[%c1_198, %c1_199, %c0_200, %c0_201] : memref<2x2x1x16xf32, #tpu.memory_space<vmem>>, vector<1x1x1x16xf32>
    %256 = vector.shape_cast %255 : vector<1x1x1x16xf32> to vector<1x16xf32>
    %257 = vector.broadcast %256 : vector<1x16xf32> to vector<16x16xf32>
    %258 = arith.addf %254, %257 : vector<16x16xf32>
    %cst_202 = arith.constant dense<0.000000e+00> : vector<16x16xf32>
    %259 = tpu.matmul %244, %251, %cst_202 {dimension_numbers = #tpu.dot_dimension_numbers<[1], [1], [0], [0], [0, 0, 1, 0], [], []>} : vector<16x16xf32>, vector<16x16xf32>, vector<16x16xf32> -> vector<16x16xf32>
    %cst_203 = arith.constant 2.500000e-01 : f32
    %260 = vector.broadcast %cst_203 : f32 to vector<16x16xf32>
    %261 = arith.mulf %259, %260 : vector<16x16xf32>
    %262 = arith.addf %261, %35 : vector<16x16xf32>
    %cst_204 = arith.constant dense<0xFF800000> : vector<16xf32>
    %263 = vector.multi_reduction <maximumf>, %262, %cst_204 [1] : vector<16x16xf32> to vector<16xf32>
    %264 = vector.shape_cast %263 : vector<16xf32> to vector<16x1xf32>
    %265 = vector.broadcast %264 : vector<16x1xf32> to vector<16x16xf32>
    %266 = arith.subf %262, %265 : vector<16x16xf32>
    %267 = math.exp %266 : vector<16x16xf32>
    %cst_205 = arith.constant dense<0.000000e+00> : vector<16xf32>
    %268 = vector.multi_reduction <add>, %267, %cst_205 [1] : vector<16x16xf32> to vector<16xf32>
    %269 = vector.shape_cast %268 : vector<16xf32> to vector<16x1xf32>
    %270 = tpu.reciprocal %269 {approx = true} : vector<16x1xf32> -> vector<16x1xf32>
    %271 = vector.broadcast %270 : vector<16x1xf32> to vector<16x16xf32>
    %272 = arith.mulf %267, %271 : vector<16x16xf32>
    %cst_206 = arith.constant dense<0.000000e+00> : vector<16x16xf32>
    %273 = tpu.matmul %272, %258, %cst_206 {dimension_numbers = #tpu.dot_dimension_numbers<[1], [0], [0], [1], [0, 0, 1, 1], [], []>} : vector<16x16xf32>, vector<16x16xf32>, vector<16x16xf32> -> vector<16x16xf32>
    %c1_207 = arith.constant 1 : index
    %c1_208 = arith.constant 1 : index
    %c0_209 = arith.constant 0 : index
    %c0_210 = arith.constant 0 : index
    %274 = vector.load %arg12[%c1_207, %c1_208, %c0_209, %c0_210] : memref<2x2x16x32xf32, #tpu.memory_space<vmem>>, vector<1x1x16x32xf32>
    %275 = vector.shape_cast %274 : vector<1x1x16x32xf32> to vector<16x32xf32>
    %cst_211 = arith.constant dense<0.000000e+00> : vector<16x32xf32>
    %276 = tpu.matmul %273, %275, %cst_211 {dimension_numbers = #tpu.dot_dimension_numbers<[1], [0], [0], [1], [0, 0, 1, 1], [], []>} : vector<16x16xf32>, vector<16x32xf32>, vector<16x32xf32> -> vector<16x32xf32>
    %277 = arith.addf %237, %276 : vector<16x32xf32>
    %c1_212 = arith.constant 1 : index
    %c0_213 = arith.constant 0 : index
    %c0_214 = arith.constant 0 : index
    %278 = vector.load %arg13[%c1_212, %c0_213, %c0_214] : memref<2x1x32xf32, #tpu.memory_space<vmem>>, vector<1x1x32xf32>
    %279 = vector.shape_cast %278 : vector<1x1x32xf32> to vector<1x32xf32>
    %280 = vector.broadcast %279 : vector<1x32xf32> to vector<16x32xf32>
    %281 = arith.addf %277, %280 : vector<16x32xf32>
    %282 = arith.addf %195, %281 : vector<16x32xf32>
    %c1_215 = arith.constant 1 : index
    %c0_216 = arith.constant 0 : index
    %c0_217 = arith.constant 0 : index
    %283 = vector.load %arg14[%c1_215, %c0_216, %c0_217] : memref<2x1x32xf32, #tpu.memory_space<vmem>>, vector<1x1x32xf32>
    %284 = vector.shape_cast %283 : vector<1x1x32xf32> to vector<1x32xf32>
    %c1_218 = arith.constant 1 : index
    %c0_219 = arith.constant 0 : index
    %c0_220 = arith.constant 0 : index
    %285 = vector.load %arg15[%c1_218, %c0_219, %c0_220] : memref<2x1x32xf32, #tpu.memory_space<vmem>>, vector<1x1x32xf32>
    %286 = vector.shape_cast %285 : vector<1x1x32xf32> to vector<1x32xf32>
    %cst_221 = arith.constant dense<0.000000e+00> : vector<16xf32>
    %287 = vector.multi_reduction <add>, %282, %cst_221 [1] : vector<16x32xf32> to vector<16xf32>
    %288 = vector.shape_cast %287 : vector<16xf32> to vector<16x1xf32>
    %cst_222 = arith.constant 3.200000e+01 : f32
    %289 = vector.broadcast %cst_222 : f32 to vector<16x1xf32>
    %290 = arith.divf %288, %289 : vector<16x1xf32>
    %291 = vector.broadcast %290 : vector<16x1xf32> to vector<16x32xf32>
    %292 = arith.subf %282, %291 : vector<16x32xf32>
    %293 = arith.mulf %292, %292 : vector<16x32xf32>
    %cst_223 = arith.constant dense<0.000000e+00> : vector<16xf32>
    %294 = vector.multi_reduction <add>, %293, %cst_223 [1] : vector<16x32xf32> to vector<16xf32>
    %295 = vector.shape_cast %294 : vector<16xf32> to vector<16x1xf32>
    %cst_224 = arith.constant 3.200000e+01 : f32
    %296 = vector.broadcast %cst_224 : f32 to vector<16x1xf32>
    %297 = arith.divf %295, %296 : vector<16x1xf32>
    %cst_225 = arith.constant 9.99999996E-13 : f32
    %298 = vector.broadcast %cst_225 : f32 to vector<16x1xf32>
    %299 = arith.addf %297, %298 : vector<16x1xf32>
    %300 = math.rsqrt %299 : vector<16x1xf32>
    %301 = vector.broadcast %300 : vector<16x1xf32> to vector<16x32xf32>
    %302 = arith.mulf %292, %301 : vector<16x32xf32>
    %303 = vector.broadcast %284 : vector<1x32xf32> to vector<16x32xf32>
    %304 = arith.mulf %302, %303 : vector<16x32xf32>
    %305 = vector.broadcast %286 : vector<1x32xf32> to vector<16x32xf32>
    %306 = arith.addf %304, %305 : vector<16x32xf32>
    %c1_226 = arith.constant 1 : index
    %c0_227 = arith.constant 0 : index
    %c0_228 = arith.constant 0 : index
    %307 = vector.load %arg16[%c1_226, %c0_227, %c0_228] : memref<2x32x64xf32, #tpu.memory_space<vmem>>, vector<1x32x64xf32>
    %308 = vector.shape_cast %307 : vector<1x32x64xf32> to vector<32x64xf32>
    %cst_229 = arith.constant dense<0.000000e+00> : vector<16x64xf32>
    %309 = tpu.matmul %306, %308, %cst_229 {dimension_numbers = #tpu.dot_dimension_numbers<[1], [0], [0], [1], [0, 0, 1, 1], [], []>} : vector<16x32xf32>, vector<32x64xf32>, vector<16x64xf32> -> vector<16x64xf32>
    %c1_230 = arith.constant 1 : index
    %c0_231 = arith.constant 0 : index
    %c0_232 = arith.constant 0 : index
    %310 = vector.load %arg17[%c1_230, %c0_231, %c0_232] : memref<2x1x64xf32, #tpu.memory_space<vmem>>, vector<1x1x64xf32>
    %311 = vector.shape_cast %310 : vector<1x1x64xf32> to vector<1x64xf32>
    %312 = vector.broadcast %311 : vector<1x64xf32> to vector<16x64xf32>
    %313 = arith.addf %309, %312 : vector<16x64xf32>
    %cst_233 = arith.constant 5.000000e-01 : f32
    %314 = vector.broadcast %cst_233 : f32 to vector<16x64xf32>
    %315 = arith.mulf %314, %313 : vector<16x64xf32>
    %cst_234 = arith.constant 4.471500e-02 : f32
    %316 = vector.broadcast %cst_234 : f32 to vector<16x64xf32>
    %317 = arith.mulf %316, %313 : vector<16x64xf32>
    %318 = arith.mulf %317, %313 : vector<16x64xf32>
    %319 = arith.mulf %318, %313 : vector<16x64xf32>
    %320 = arith.addf %313, %319 : vector<16x64xf32>
    %cst_235 = arith.constant 0.797884583 : f32
    %321 = vector.broadcast %cst_235 : f32 to vector<16x64xf32>
    %322 = arith.mulf %321, %320 : vector<16x64xf32>
    %323 = math.tanh %322 : vector<16x64xf32>
    %cst_236 = arith.constant 1.000000e+00 : f32
    %324 = vector.broadcast %cst_236 : f32 to vector<16x64xf32>
    %325 = arith.addf %324, %323 : vector<16x64xf32>
    %326 = arith.mulf %315, %325 : vector<16x64xf32>
    %c1_237 = arith.constant 1 : index
    %c0_238 = arith.constant 0 : index
    %c0_239 = arith.constant 0 : index
    %327 = vector.load %arg18[%c1_237, %c0_238, %c0_239] : memref<2x64x32xf32, #tpu.memory_space<vmem>>, vector<1x64x32xf32>
    %328 = vector.shape_cast %327 : vector<1x64x32xf32> to vector<64x32xf32>
    %cst_240 = arith.constant dense<0.000000e+00> : vector<16x32xf32>
    %329 = tpu.matmul %326, %328, %cst_240 {dimension_numbers = #tpu.dot_dimension_numbers<[1], [0], [0], [1], [0, 0, 1, 1], [], []>} : vector<16x64xf32>, vector<64x32xf32>, vector<16x32xf32> -> vector<16x32xf32>
    %c1_241 = arith.constant 1 : index
    %c0_242 = arith.constant 0 : index
    %c0_243 = arith.constant 0 : index
    %330 = vector.load %arg19[%c1_241, %c0_242, %c0_243] : memref<2x1x32xf32, #tpu.memory_space<vmem>>, vector<1x1x32xf32>
    %331 = vector.shape_cast %330 : vector<1x1x32xf32> to vector<1x32xf32>
    %332 = vector.broadcast %331 : vector<1x32xf32> to vector<16x32xf32>
    %333 = arith.addf %329, %332 : vector<16x32xf32>
    %334 = arith.addf %306, %333 : vector<16x32xf32>
    %c1_244 = arith.constant 1 : index
    %c0_245 = arith.constant 0 : index
    %c0_246 = arith.constant 0 : index
    %335 = vector.load %arg20[%c1_244, %c0_245, %c0_246] : memref<2x1x32xf32, #tpu.memory_space<vmem>>, vector<1x1x32xf32>
    %336 = vector.shape_cast %335 : vector<1x1x32xf32> to vector<1x32xf32>
    %c1_247 = arith.constant 1 : index
    %c0_248 = arith.constant 0 : index
    %c0_249 = arith.constant 0 : index
    %337 = vector.load %arg21[%c1_247, %c0_248, %c0_249] : memref<2x1x32xf32, #tpu.memory_space<vmem>>, vector<1x1x32xf32>
    %338 = vector.shape_cast %337 : vector<1x1x32xf32> to vector<1x32xf32>
    %cst_250 = arith.constant dense<0.000000e+00> : vector<16xf32>
    %339 = vector.multi_reduction <add>, %334, %cst_250 [1] : vector<16x32xf32> to vector<16xf32>
    %340 = vector.shape_cast %339 : vector<16xf32> to vector<16x1xf32>
    %cst_251 = arith.constant 3.200000e+01 : f32
    %341 = vector.broadcast %cst_251 : f32 to vector<16x1xf32>
    %342 = arith.divf %340, %341 : vector<16x1xf32>
    %343 = vector.broadcast %342 : vector<16x1xf32> to vector<16x32xf32>
    %344 = arith.subf %334, %343 : vector<16x32xf32>
    %345 = arith.mulf %344, %344 : vector<16x32xf32>
    %cst_252 = arith.constant dense<0.000000e+00> : vector<16xf32>
    %346 = vector.multi_reduction <add>, %345, %cst_252 [1] : vector<16x32xf32> to vector<16xf32>
    %347 = vector.shape_cast %346 : vector<16xf32> to vector<16x1xf32>
    %cst_253 = arith.constant 3.200000e+01 : f32
    %348 = vector.broadcast %cst_253 : f32 to vector<16x1xf32>
    %349 = arith.divf %347, %348 : vector<16x1xf32>
    %cst_254 = arith.constant 9.99999996E-13 : f32
    %350 = vector.broadcast %cst_254 : f32 to vector<16x1xf32>
    %351 = arith.addf %349, %350 : vector<16x1xf32>
    %352 = math.rsqrt %351 : vector<16x1xf32>
    %353 = vector.broadcast %352 : vector<16x1xf32> to vector<16x32xf32>
    %354 = arith.mulf %344, %353 : vector<16x32xf32>
    %355 = vector.broadcast %336 : vector<1x32xf32> to vector<16x32xf32>
    %356 = arith.mulf %354, %355 : vector<16x32xf32>
    %357 = vector.broadcast %338 : vector<1x32xf32> to vector<16x32xf32>
    %358 = arith.addf %356, %357 : vector<16x32xf32>
    %c2 = arith.constant 2 : index
    %c0_255 = arith.constant 0 : index
    %c0_256 = arith.constant 0 : index
    %359 = vector.load %arg29[%c2, %c0_255, %c0_256] : memref<3x16x32xf32, #tpu.memory_space<vmem>>, vector<1x16x32xf32>
    %360 = vector.shape_cast %359 : vector<1x16x32xf32> to vector<16x32xf32>
    %361 = vector.shape_cast %358 : vector<16x32xf32> to vector<1x16x32xf32>
    tpu.vector_store %arg29[%c2, %c0_255, %c0_256], %361 {strides = array<i32>} : memref<3x16x32xf32, #tpu.memory_space<vmem>>, vector<1x16x32xf32>,
    %c0_257 = arith.constant 0 : index
    %c0_258 = arith.constant 0 : index
    %362 = vector.load %arg22[%c0_257, %c0_258] : memref<32x32xf32, #tpu.memory_space<vmem>>, vector<32x32xf32>
    %cst_259 = arith.constant dense<0.000000e+00> : vector<16x32xf32>
    %363 = tpu.matmul %358, %362, %cst_259 {dimension_numbers = #tpu.dot_dimension_numbers<[1], [0], [0], [1], [0, 0, 1, 1], [], []>} : vector<16x32xf32>, vector<32x32xf32>, vector<16x32xf32> -> vector<16x32xf32>
    %c0_260 = arith.constant 0 : index
    %c0_261 = arith.constant 0 : index
    %364 = vector.load %arg23[%c0_260, %c0_261] : memref<1x32xf32, #tpu.memory_space<vmem>>, vector<1x32xf32>
    %365 = vector.broadcast %364 : vector<1x32xf32> to vector<16x32xf32>
    %366 = arith.addf %363, %365 : vector<16x32xf32>
    %cst_262 = arith.constant 5.000000e-01 : f32
    %367 = vector.broadcast %cst_262 : f32 to vector<16x32xf32>
    %368 = arith.mulf %367, %366 : vector<16x32xf32>
    %cst_263 = arith.constant 4.471500e-02 : f32
    %369 = vector.broadcast %cst_263 : f32 to vector<16x32xf32>
    %370 = arith.mulf %369, %366 : vector<16x32xf32>
    %371 = arith.mulf %370, %366 : vector<16x32xf32>
    %372 = arith.mulf %371, %366 : vector<16x32xf32>
    %373 = arith.addf %366, %372 : vector<16x32xf32>
    %cst_264 = arith.constant 0.797884583 : f32
    %374 = vector.broadcast %cst_264 : f32 to vector<16x32xf32>
    %375 = arith.mulf %374, %373 : vector<16x32xf32>
    %376 = math.tanh %375 : vector<16x32xf32>
    %cst_265 = arith.constant 1.000000e+00 : f32
    %377 = vector.broadcast %cst_265 : f32 to vector<16x32xf32>
    %378 = arith.addf %377, %376 : vector<16x32xf32>
    %379 = arith.mulf %368, %378 : vector<16x32xf32>
    %c0_266 = arith.constant 0 : index
    %c0_267 = arith.constant 0 : index
    %380 = vector.load %arg24[%c0_266, %c0_267] : memref<1x32xf32, #tpu.memory_space<vmem>>, vector<1x32xf32>
    %c0_268 = arith.constant 0 : index
    %c0_269 = arith.constant 0 : index
    %381 = vector.load %arg25[%c0_268, %c0_269] : memref<1x32xf32, #tpu.memory_space<vmem>>, vector<1x32xf32>
    %cst_270 = arith.constant dense<0.000000e+00> : vector<16xf32>
    %382 = vector.multi_reduction <add>, %379, %cst_270 [1] : vector<16x32xf32> to vector<16xf32>
    %383 = vector.shape_cast %382 : vector<16xf32> to vector<16x1xf32>
    %cst_271 = arith.constant 3.200000e+01 : f32
    %384 = vector.broadcast %cst_271 : f32 to vector<16x1xf32>
    %385 = arith.divf %383, %384 : vector<16x1xf32>
    %386 = vector.broadcast %385 : vector<16x1xf32> to vector<16x32xf32>
    %387 = arith.subf %379, %386 : vector<16x32xf32>
    %388 = arith.mulf %387, %387 : vector<16x32xf32>
    %cst_272 = arith.constant dense<0.000000e+00> : vector<16xf32>
    %389 = vector.multi_reduction <add>, %388, %cst_272 [1] : vector<16x32xf32> to vector<16xf32>
    %390 = vector.shape_cast %389 : vector<16xf32> to vector<16x1xf32>
    %cst_273 = arith.constant 3.200000e+01 : f32
    %391 = vector.broadcast %cst_273 : f32 to vector<16x1xf32>
    %392 = arith.divf %390, %391 : vector<16x1xf32>
    %cst_274 = arith.constant 9.99999996E-13 : f32
    %393 = vector.broadcast %cst_274 : f32 to vector<16x1xf32>
    %394 = arith.addf %392, %393 : vector<16x1xf32>
    %395 = math.rsqrt %394 : vector<16x1xf32>
    %396 = vector.broadcast %395 : vector<16x1xf32> to vector<16x32xf32>
    %397 = arith.mulf %387, %396 : vector<16x32xf32>
    %398 = vector.broadcast %380 : vector<1x32xf32> to vector<16x32xf32>
    %399 = arith.mulf %397, %398 : vector<16x32xf32>
    %400 = vector.broadcast %381 : vector<1x32xf32> to vector<16x32xf32>
    %401 = arith.addf %399, %400 : vector<16x32xf32>
    %c0_275 = arith.constant 0 : index
    %c0_276 = arith.constant 0 : index
    %402 = vector.load %arg26[%c0_275, %c0_276] : memref<128x32xf32, #tpu.memory_space<vmem>>, vector<128x32xf32>
    %cst_277 = arith.constant dense<0.000000e+00> : vector<16x128xf32>
    %403 = tpu.matmul %401, %402, %cst_277 {dimension_numbers = #tpu.dot_dimension_numbers<[1], [1], [0], [0], [0, 0, 1, 0], [], []>} : vector<16x32xf32>, vector<128x32xf32>, vector<16x128xf32> -> vector<16x128xf32>
    %c0_278 = arith.constant 0 : index
    %c0_279 = arith.constant 0 : index
    %404 = vector.load %arg27[%c0_278, %c0_279] : memref<1x128xf32, #tpu.memory_space<vmem>>, vector<1x128xf32>
    %405 = vector.broadcast %404 : vector<1x128xf32> to vector<16x128xf32>
    %406 = arith.addf %403, %405 : vector<16x128xf32>
    %c0_280 = arith.constant 0 : index
    %c0_281 = arith.constant 0 : index
    %407 = vector.load %arg28[%c0_280, %c0_281] : memref<16x128xf32, #tpu.memory_space<vmem>>, vector<16x128xf32>
    tpu.vector_store %arg28[%c0_280, %c0_281], %406 {strides = array<i32>} : memref<16x128xf32, #tpu.memory_space<vmem>>, vector<16x128xf32>,
    return
  }
  func.func @transform_0(%arg0: i32) -> (i32, i32) {
    %c0_i32 = arith.constant 0 : i32
    %c0_i32_0 = arith.constant 0 : i32
    %c0_i32_1 = arith.constant 0 : i32
    return %c0_i32, %c0_i32_0 : i32, i32
  }
  func.func @transform_1(%arg0: i32) -> (i32, i32) {
    %c0_i32 = arith.constant 0 : i32
    %c0_i32_0 = arith.constant 0 : i32
    %c0_i32_1 = arith.constant 0 : i32
    return %c0_i32, %c0_i32_0 : i32, i32
  }
  func.func @transform_2(%arg0: i32) -> (i32, i32) {
    %c0_i32 = arith.constant 0 : i32
    %c0_i32_0 = arith.constant 0 : i32
    %c0_i32_1 = arith.constant 0 : i32
    return %c0_i32, %c0_i32_0 : i32, i32
  }
  func.func @transform_3(%arg0: i32) -> (i32, i32) {
    %c0_i32 = arith.constant 0 : i32
    %c0_i32_0 = arith.constant 0 : i32
    %c0_i32_1 = arith.constant 0 : i32
    return %c0_i32, %c0_i32_0 : i32, i32
  }
  func.func @transform_4(%arg0: i32) -> (i32, i32) {
    %c0_i32 = arith.constant 0 : i32
    %c0_i32_0 = arith.constant 0 : i32
    %c0_i32_1 = arith.constant 0 : i32
    return %c0_i32, %c0_i32_0 : i32, i32
  }
  func.func @transform_5(%arg0: i32) -> (i32, i32, i32, i32) {
    %c0_i32 = arith.constant 0 : i32
    %c0_i32_0 = arith.constant 0 : i32
    %c0_i32_1 = arith.constant 0 : i32
    %c0_i32_2 = arith.constant 0 : i32
    %c0_i32_3 = arith.constant 0 : i32
    return %c0_i32, %c0_i32_0, %c0_i32_1, %c0_i32_2 : i32, i32, i32, i32
  }
  func.func @transform_6(%arg0: i32) -> (i32, i32, i32, i32) {
    %c0_i32 = arith.constant 0 : i32
    %c0_i32_0 = arith.constant 0 : i32
    %c0_i32_1 = arith.constant 0 : i32
    %c0_i32_2 = arith.constant 0 : i32
    %c0_i32_3 = arith.constant 0 : i32
    return %c0_i32, %c0_i32_0, %c0_i32_1, %c0_i32_2 : i32, i32, i32, i32
  }
  func.func @transform_7(%arg0: i32) -> (i32, i32, i32, i32) {
    %c0_i32 = arith.constant 0 : i32
    %c0_i32_0 = arith.constant 0 : i32
    %c0_i32_1 = arith.constant 0 : i32
    %c0_i32_2 = arith.constant 0 : i32
    %c0_i32_3 = arith.constant 0 : i32
    return %c0_i32, %c0_i32_0, %c0_i32_1, %c0_i32_2 : i32, i32, i32, i32
  }
  func.func @transform_8(%arg0: i32) -> (i32, i32, i32, i32) {
    %c0_i32 = arith.constant 0 : i32
    %c0_i32_0 = arith.constant 0 : i32
    %c0_i32_1 = arith.constant 0 : i32
    %c0_i32_2 = arith.constant 0 : i32
    %c0_i32_3 = arith.constant 0 : i32
    return %c0_i32, %c0_i32_0, %c0_i32_1, %c0_i32_2 : i32, i32, i32, i32
  }
  func.func @transform_9(%arg0: i32) -> (i32, i32, i32, i32) {
    %c0_i32 = arith.constant 0 : i32
    %c0_i32_0 = arith.constant 0 : i32
    %c0_i32_1 = arith.constant 0 : i32
    %c0_i32_2 = arith.constant 0 : i32
    %c0_i32_3 = arith.constant 0 : i32
    return %c0_i32, %c0_i32_0, %c0_i32_1, %c0_i32_2 : i32, i32, i32, i32
  }
  func.func @transform_10(%arg0: i32) -> (i32, i32, i32, i32) {
    %c0_i32 = arith.constant 0 : i32
    %c0_i32_0 = arith.constant 0 : i32
    %c0_i32_1 = arith.constant 0 : i32
    %c0_i32_2 = arith.constant 0 : i32
    %c0_i32_3 = arith.constant 0 : i32
    return %c0_i32, %c0_i32_0, %c0_i32_1, %c0_i32_2 : i32, i32, i32, i32
  }
  func.func @transform_11(%arg0: i32) -> (i32, i32, i32, i32) {
    %c0_i32 = arith.constant 0 : i32
    %c0_i32_0 = arith.constant 0 : i32
    %c0_i32_1 = arith.constant 0 : i32
    %c0_i32_2 = arith.constant 0 : i32
    %c0_i32_3 = arith.constant 0 : i32
    return %c0_i32, %c0_i32_0, %c0_i32_1, %c0_i32_2 : i32, i32, i32, i32
  }
  func.func @transform_12(%arg0: i32) -> (i32, i32, i32) {
    %c0_i32 = arith.constant 0 : i32
    %c0_i32_0 = arith.constant 0 : i32
    %c0_i32_1 = arith.constant 0 : i32
    %c0_i32_2 = arith.constant 0 : i32
    return %c0_i32, %c0_i32_0, %c0_i32_1 : i32, i32, i32
  }
  func.func @transform_13(%arg0: i32) -> (i32, i32, i32) {
    %c0_i32 = arith.constant 0 : i32
    %c0_i32_0 = arith.constant 0 : i32
    %c0_i32_1 = arith.constant 0 : i32
    %c0_i32_2 = arith.constant 0 : i32
    return %c0_i32, %c0_i32_0, %c0_i32_1 : i32, i32, i32
  }
  func.func @transform_14(%arg0: i32) -> (i32, i32, i32) {
    %c0_i32 = arith.constant 0 : i32
    %c0_i32_0 = arith.constant 0 : i32
    %c0_i32_1 = arith.constant 0 : i32
    %c0_i32_2 = arith.constant 0 : i32
    return %c0_i32, %c0_i32_0, %c0_i32_1 : i32, i32, i32
  }
  func.func @transform_15(%arg0: i32) -> (i32, i32, i32) {
    %c0_i32 = arith.constant 0 : i32
    %c0_i32_0 = arith.constant 0 : i32
    %c0_i32_1 = arith.constant 0 : i32
    %c0_i32_2 = arith.constant 0 : i32
    return %c0_i32, %c0_i32_0, %c0_i32_1 : i32, i32, i32
  }
  func.func @transform_16(%arg0: i32) -> (i32, i32, i32) {
    %c0_i32 = arith.constant 0 : i32
    %c0_i32_0 = arith.constant 0 : i32
    %c0_i32_1 = arith.constant 0 : i32
    %c0_i32_2 = arith.constant 0 : i32
    return %c0_i32, %c0_i32_0, %c0_i32_1 : i32, i32, i32
  }
  func.func @transform_17(%arg0: i32) -> (i32, i32, i32) {
    %c0_i32 = arith.constant 0 : i32
    %c0_i32_0 = arith.constant 0 : i32
    %c0_i32_1 = arith.constant 0 : i32
    %c0_i32_2 = arith.constant 0 : i32
    return %c0_i32, %c0_i32_0, %c0_i32_1 : i32, i32, i32
  }
  func.func @transform_18(%arg0: i32) -> (i32, i32, i32) {
    %c0_i32 = arith.constant 0 : i32
    %c0_i32_0 = arith.constant 0 : i32
    %c0_i32_1 = arith.constant 0 : i32
    %c0_i32_2 = arith.constant 0 : i32
    return %c0_i32, %c0_i32_0, %c0_i32_1 : i32, i32, i32
  }
  func.func @transform_19(%arg0: i32) -> (i32, i32, i32) {
    %c0_i32 = arith.constant 0 : i32
    %c0_i32_0 = arith.constant 0 : i32
    %c0_i32_1 = arith.constant 0 : i32
    %c0_i32_2 = arith.constant 0 : i32
    return %c0_i32, %c0_i32_0, %c0_i32_1 : i32, i32, i32
  }
  func.func @transform_20(%arg0: i32) -> (i32, i32, i32) {
    %c0_i32 = arith.constant 0 : i32
    %c0_i32_0 = arith.constant 0 : i32
    %c0_i32_1 = arith.constant 0 : i32
    %c0_i32_2 = arith.constant 0 : i32
    return %c0_i32, %c0_i32_0, %c0_i32_1 : i32, i32, i32
  }
  func.func @transform_21(%arg0: i32) -> (i32, i32) {
    %c0_i32 = arith.constant 0 : i32
    %c0_i32_0 = arith.constant 0 : i32
    %c0_i32_1 = arith.constant 0 : i32
    return %c0_i32, %c0_i32_0 : i32, i32
  }
  func.func @transform_22(%arg0: i32) -> (i32, i32) {
    %c0_i32 = arith.constant 0 : i32
    %c0_i32_0 = arith.constant 0 : i32
    %c0_i32_1 = arith.constant 0 : i32
    return %c0_i32, %c0_i32_0 : i32, i32
  }
  func.func @transform_23(%arg0: i32) -> (i32, i32) {
    %c0_i32 = arith.constant 0 : i32
    %c0_i32_0 = arith.constant 0 : i32
    %c0_i32_1 = arith.constant 0 : i32
    return %c0_i32, %c0_i32_0 : i32, i32
  }
  func.func @transform_24(%arg0: i32) -> (i32, i32) {
    %c0_i32 = arith.constant 0 : i32
    %c0_i32_0 = arith.constant 0 : i32
    %c0_i32_1 = arith.constant 0 : i32
    return %c0_i32, %c0_i32_0 : i32, i32
  }
  func.func @transform_25(%arg0: i32) -> (i32, i32) {
    %c0_i32 = arith.constant 0 : i32
    %c0_i32_0 = arith.constant 0 : i32
    %c0_i32_1 = arith.constant 0 : i32
    return %c0_i32, %c0_i32_0 : i32, i32
  }
  func.func @transform_26(%arg0: i32) -> (i32, i32) {
    %c0_i32 = arith.constant 0 : i32
    %c0_i32_0 = arith.constant 0 : i32
    %c0_i32_1 = arith.constant 0 : i32
    return %c0_i32, %c0_i32_0 : i32, i32
  }
  func.func @transform_27(%arg0: i32) -> (i32, i32) {
    %c0_i32 = arith.constant 0 : i32
    %c0_i32_0 = arith.constant 0 : i32
    %c0_i32_1 = arith.constant 0 : i32
    return %c0_i32, %c0_i32_0 : i32, i32
  }
  func.func @transform_28(%arg0: i32) -> (i32, i32, i32) {
    %c0_i32 = arith.constant 0 : i32
    %c0_i32_0 = arith.constant 0 : i32
    %c0_i32_1 = arith.constant 0 : i32
    %c0_i32_2 = arith.constant 0 : i32
    return %c0_i32, %c0_i32_0, %c0_i32_1 : i32, i32, i32
  }
}

</mosaic_0001>

<bundles_post_ra>
// kernel: eq.8
= control target key start
LH: loop header
LB: loop body
LE: loop exit
PB: predicated region body
PF: predicated region fallthrough
CT: control target
= control target key end

     0   :  { %vm7_vm0 = vcmask 64512   ;;  %vm13_vm1 = vcmask 130112   ;;  %s39_s0 = inlined_call_operand.vmem [shape: s32[2,8], index: 0, kind: input, shape index: {}]   ;;  %s40_s1 = inlined_call_operand.vmem [shape: s32[16], index: 1, kind: output, shape index: {}]  }
   0x1   :  { %v4_v0 = vld [vmem:[%s39_s0] sm:$0x3]  ;;  %s22_s0 = smov 8  }
   0x2   :  { %5 = vst [vmem:[#allocation1] sm:$0x3] %v4_v0 }
   0x9   :  { %v10_v1 = vld [vmem:[#allocation1 + $0x1] sm:$0x1]   ;;  %v6_v2 = vld [vmem:[#allocation1] sm:$0x1]  }
   0xa   :  { %11 = vrot.lane.b32.xlu0 %v10_v1, %s22_s0  ;;  %8 = vst.msk [vmem:[#allocation0] sm:$0x1] %vm7_vm0, %v6_v2  }
  0x7c   :  { %v12_v3 = vpop.permute.xlu0 %11  }
  0x7d   :  { %14 = vst.msk [vmem:[#allocation0] sm:$0x1] %vm13_vm1, %v12_v3  }
  0x84   :  { %v18_v4 = vld [vmem:[#allocation0] sm:$0x1] }
  0x85   :  { %20 = vst [vmem:[%s40_s1] sm:$0x1] %v18_v4 }

// kernel: sequence_expert_forward.1
= control target key start
LH: loop header
LB: loop body
LE: loop exit
PB: predicated region body
PF: predicated region fallthrough
CT: control target
= control target key end

     0   :  { %s5375_s0 = inlined_call_operand.vmem [shape: s32[16,1], index: 0, kind: input, shape index: {}]   ;;  %s5376_s1 = inlined_call_operand.vmem [shape: f32[16,32], index: 1, kind: input, shape index: {}]   ;;  %s5377_s2 = inlined_call_operand.vmem [shape: f32[16,16], index: 2, kind: input, shape index: {}]   ;;  %s5378_s3 = inlined_call_operand.vmem [shape: f32[1,32], index: 3, kind: input, shape index: {}]   ;;  %s5379_s4 = inlined_call_operand.vmem [shape: f32[1,32], index: 4, kind: input, shape index: {}]   ;;  %s5380_s5 = inlined_call_operand.vmem [shape: f32[2,2,32,16], index: 5, kind: input, shape index: {}]   ;;  %s5381_s6 = inlined_call_operand.vmem [shape: f32[2,2,1,16], index: 6, kind: input, shape index: {}]   ;;  %s5382_s7 = inlined_call_operand.vmem [shape: f32[2,2,32,16], index: 7, kind: input, shape index: {}]   ;;  %s5383_s8 = inlined_call_operand.vmem [shape: f32[2,2,1,16], index: 8, kind: input, shape index: {}]   ;;  %s5384_s9 = inlined_call_operand.vmem [shape: f32[2,2,32,16], index: 9, kind: input, shape index: {}]   ;;  %s5385_s10 = inlined_call_operand.vmem [shape: f32[2,2,1,16], index: 10, kind: input, shape index: {}]   ;;  %s5386_s11 = inlined_call_operand.vmem [shape: f32[2,2,16,32], index: 11, kind: input, shape index: {}]   ;;  %s5387_s12 = inlined_call_operand.vmem [shape: f32[2,1,32], index: 12, kind: input, shape index: {}]   ;;  %s5388_s13 = inlined_call_operand.vmem [shape: f32[2,1,32], index: 13, kind: input, shape index: {}]   ;;  %s5389_s14 = inlined_call_operand.vmem [shape: f32[2,1,32], index: 14, kind: input, shape index: {}]   ;;  %s5390_s15 = inlined_call_operand.vmem [shape: f32[2,32,64], index: 15, kind: input, shape index: {}]   ;;  %s5391_s16 = inlined_call_operand.vmem [shape: f32[2,1,64], index: 16, kind: input, shape index: {}]   ;;  %s5392_s17 = inlined_call_operand.vmem [shape: f32[2,64,32], index: 17, kind: input, shape index: {}]   ;;  %s5393_s18 = inlined_call_operand.vmem [shape: f32[2,1,32], index: 18, kind: input, shape index: {}]   ;;  %s5394_s19 = inlined_call_operand.vmem [shape: f32[2,1,32], index: 19, kind: input, shape index: {}]   ;;  %s5395_s20 = inlined_call_operand.vmem [shape: f32[2,1,32], index: 20, kind: input, shape index: {}]   ;;  %s5396_s21 = inlined_call_operand.vmem [shape: f32[32,32], index: 21, kind: input, shape index: {}]   ;;  %s5397_s22 = inlined_call_operand.vmem [shape: f32[1,32], index: 22, kind: input, shape index: {}]   ;;  %s5398_s23 = inlined_call_operand.vmem [shape: f32[1,32], index: 23, kind: input, shape index: {}]   ;;  %s5399_s24 = inlined_call_operand.vmem [shape: f32[1,32], index: 24, kind: input, shape index: {}]   ;;  %s5400_s25 = inlined_call_operand.vmem [shape: f32[128,32], index: 25, kind: input, shape index: {}]   ;;  %s5401_s26 = inlined_call_operand.vmem [shape: f32[1,128], index: 26, kind: input, shape index: {}]   ;;  %s5402_s27 = inlined_call_operand.hbm [shape: f32[16,128], index: 27, kind: output, shape index: {0}]   ;;  %s5403_s28 = inlined_call_operand.vmem [shape: f32[3,16,32], index: 28, kind: output, shape index: {1}]  }
   0x1   :  { %5416 = sst [smem:[#allocation5_spill]] %s5375_s0 }
   0x2   :  { %5417 = sst [smem:[#allocation6_spill]] %s5376_s1 }
   0x3   :  { %5418 = sst [smem:[#allocation7_spill]] %s5377_s2 }
   0x4   :  { %5419 = sst [smem:[#allocation8_spill]] %s5378_s3 }
   0x5   :  { %5420 = sst [smem:[#allocation9_spill]] %s5379_s4 }
   0x6   :  { %5421 = sst [smem:[#allocation10_spill]] %s5380_s5 }
   0x7   :  { %5422 = sst [smem:[#allocation11_spill]] %s5381_s6 }
   0x8   :  { %5423 = sst [smem:[#allocation12_spill]] %s5382_s7 }
   0x9   :  { %5424 = sst [smem:[#allocation13_spill]] %s5383_s8 }
   0xa   :  { %5425 = sst [smem:[#allocation14_spill]] %s5384_s9 }
   0xb   :  { %5426 = sst [smem:[#allocation15_spill]] %s5385_s10 }
   0xc   :  { %5427 = sst [smem:[#allocation16_spill]] %s5386_s11 }
   0xd   :  { %5428 = sst [smem:[#allocation17_spill]] %s5387_s12 }
   0xe   :  { %5429 = sst [smem:[#allocation18_spill]] %s5399_s24 }
   0xf   :  { %5430 = sst [smem:[#allocation19_spill]] %s5401_s26 }
  0x10   :  { %5431 = sst [smem:[#allocation20_spill]] %s5402_s27 }
  0x11   :  { %s5432_s9 = sld [smem:[#allocation5_spill]]  ;;  %v105_v1 = vld [vmem:[%s5400_s25] sm:$0xff]  ;;  %v4515_v2 = vmov 0   ;;  %v106_v3 = vld [vmem:[%s5400_s25 + $0x8] sm:$0xff]  ;;  %v107_v4 = vld [vmem:[%s5400_s25 + $0x10] sm:$0xff] }
  0x12   :  { %4422 = vset.pattern.permute.xlu0 %v4515_v2  ;;  %v108_v5 = vld [vmem:[%s5400_s25 + $0x18] sm:$0xff]  ;;  %v4125_v6 = vpack.c.bf16 %v106_v3, %v105_v1  ;;  %v109_v9 = vld [vmem:[%s5400_s25 + $0x20] sm:$0xff]  ;;  %v110_v10 = vld [vmem:[%s5400_s25 + $0x28] sm:$0xff] }
  0x13   :  { %v4129_v7 = vpack.c.bf16 %v108_v5, %v107_v4  ;;  %v4133_v11 = vpack.c.bf16 %v110_v10, %v109_v9 }
  0x14   :  { %4126 = vmatprep.subr.bf16.mxu0 %v4125_v6 }
  0x15   :  { %4128 = vmatpush3.bf16.msra.mxu0 %v4125_v6 }
  0x16   :  { %4130 = vmatprep.subr.bf16.mxu0 %v4129_v7 }
  0x17   :  { %v89_v0 = vld [vmem:[%s5432_s9] sm:$0xff]  ;;  %v90_v8 = vld [vmem:[%s5432_s9 + $0x8] sm:$0xff] }
  0x18   :  { %94 = vperm.xlu0 %4422, %v89_v0  }
  0x1c   :  { %97 = vperm.xlu0 %4422, %v90_v8  }
  0x1d   :  { %34 = vsyncpa [#allocation3], 0  ;;  %v111_v12 = vld [vmem:[%s5400_s25 + $0x30] sm:$0xff]  ;;  %v112_v13 = vld [vmem:[%s5400_s25 + $0x38] sm:$0xff]  ;;  %4132 = vmatpush3.bf16.msra.mxu0 %v4129_v7  ;;  %v91_v27 = vlaneseq  ;;  %v4516_v30 = vmov 1.0   ;;  %s5433_s29 = sld [smem:[#allocation6_spill]] }
  0x1e   :  { %4134 = vmatprep.subr.bf16.mxu0 %v4133_v11  ;;  %v4137_v14 = vpack.c.bf16 %v112_v13, %v111_v12  ;;  %v113_v15 = vld [vmem:[%s5400_s25 + $0x40] sm:$0xff]  ;;  %v114_v16 = vld [vmem:[%s5400_s25 + $0x48] sm:$0xff]  ;;  %v115_v18 = vld [vmem:[%s5400_s25 + $0x50] sm:$0xff]  ;;  %vm200_vm2 = vcmask 261120   ;;  %s5434_s4 = sld [smem:[#allocation10_spill]]  ;;  %s5435_s11 = sld [smem:[#allocation12_spill]] }
  0x1f   :  { %v4141_v17 = vpack.c.bf16 %v114_v16, %v113_v15  ;;  %v116_v19 = vld [vmem:[%s5400_s25 + $0x58] sm:$0xff]  ;;  %v117_v21 = vld [vmem:[%s5400_s25 + $0x60] sm:$0xff]  ;;  %v118_v22 = vld [vmem:[%s5400_s25 + $0x68] sm:$0xff]  ;;  %v92_v28 = vand.u32 127, %v91_v27  ;;  %s5436_s1 = sld [smem:[#allocation8_spill]]  ;;  %s5437_s30 = sld [smem:[#allocation9_spill]] }
  0x20   :  { %v4145_v20 = vpack.c.bf16 %v116_v19, %v115_v18  ;;  %v4149_v23 = vpack.c.bf16 %v118_v22, %v117_v21  ;;  %v119_v24 = vld [vmem:[%s5400_s25 + $0x70] sm:$0xff]  ;;  %v120_v25 = vld [vmem:[%s5400_s25 + $0x78] sm:$0xff]  ;;  %s5438_s12 = sld [smem:[#allocation14_spill]]  ;;  %s5439_s2 = sld [smem:[#allocation11_spill]]  ;;  %vm512_vm3 = vcmask 130048   ;;  %vm1512_vm5 = vcmask 523264   ;;  %vm5272_vm6 = vmpackc.low %vm200_vm2, %vm200_vm2 }
  0x21   :  { %4136 = vmatpush3.bf16.msra.mxu0 %v4133_v11  ;;  %v4153_v26 = vpack.c.bf16 %v120_v25, %v119_v24  ;;  %s5440_s8 = sld [smem:[#allocation13_spill]]  ;;  %vm4812_vm4 = vmpackc.low %vm512_vm3, %vm512_vm3  ;;  %s5443_s0 = sld [smem:[#allocation15_spill]] }
  0x22   :  { %4138 = vmatprep.subr.bf16.mxu0 %v4137_v14  ;;  %s5444_s3 = sld [smem:[#allocation7_spill]]  ;;  %s5445_s6 = sld [smem:[#allocation16_spill]] }
  0x23   :  { %v121_v32 = vld [vmem:[%s5433_s29] sm:$0xff]  ;;  %v122_v34 = vld [vmem:[%s5433_s29 + $0x8] sm:$0xff]  ;;  %s5446_s9 = sld [smem:[#allocation17_spill]] }
  0x24   :  { %v248_v50 = vld [vmem:[%s5434_s4] sm:$0xff]  ;;  %v249_v51 = vld [vmem:[%s5434_s4 + $0x8] sm:$0xff]  ;;  %v250_v53 = vld [vmem:[%s5434_s4 + $0x10] sm:$0xff] }
  0x25   :  { %4140 = vmatpush3.bf16.msra.mxu0 %v4137_v14  ;;  %v4157_v52 = vpack.c.bf16 %v249_v51, %v248_v50  ;;  %v251_v54 = vld [vmem:[%s5434_s4 + $0x18] sm:$0xff]  ;;  %v340_v56 = vld [vmem:[%s5435_s11] sm:$0xff]  ;;  %v341_v57 = vld [vmem:[%s5435_s11 + $0x8] sm:$0xff] }
  0x26   :  { %4142 = vmatprep.subr.bf16.mxu0 %v4141_v17  ;;  %v4161_v55 = vpack.c.bf16 %v251_v54, %v250_v53  ;;  %v4165_v58 = vpack.c.bf16 %v341_v57, %v340_v56  ;;  %v3384_v2 = vld [vmem:[%s5436_s1] ss:$0 sm:$0xff]  ;;  %v342_v9 = vld [vmem:[%s5435_s11 + $0x10] sm:$0xff]  ;;  %v343_v10 = vld [vmem:[%s5435_s11 + $0x18] sm:$0xff] }
  0x27   :  { %v3385_v4 = vld [vmem:[%s5437_s30] ss:$0 sm:$0xff]  ;;  %v4169_v13 = vpack.c.bf16 %v343_v10, %v342_v9  ;;  %v427_v15 = vld [vmem:[%s5438_s12 + $0x8] sm:$0xff]  ;;  %v429_v18 = vld [vmem:[%s5438_s12 + $0x18] sm:$0xff] }
  0x28   :  { %v426_v14 = vld [vmem:[%s5438_s12] sm:$0xff] }
  0x29   :  { %4144 = vmatpush3.bf16.msra.mxu0 %v4141_v17  ;;  %v4173_v16 = vpack.c.bf16 %v427_v15, %v426_v14  ;;  %v428_v17 = vld [vmem:[%s5438_s12 + $0x10] sm:$0xff]  ;;  %v3389_v24 = vld [vmem:[%s5440_s8] ss:$0 sm:$0xff] }
  0x2a   :  { %4146 = vmatprep.subr.bf16.mxu0 %v4145_v20  ;;  %v4177_v19 = vpack.c.bf16 %v429_v18, %v428_v17  ;;  %v3409_v18 = vld [vmem:[%s5435_s11 + $0x20] sm:$0xff] }
  0x2d   :  { %4148 = vmatpush3.bf16.msra.mxu0 %v4145_v20  ;;  %v3386_v20 = vld [vmem:[%s5439_s2] ss:$0 sm:$0xff] }
  0x2e   :  { %4150 = vmatprep.subr.bf16.mxu0 %v4149_v23 }
  0x31   :  { %4152 = vmatpush3.bf16.msra.mxu0 %v4149_v23 }
  0x32   :  { %4154 = vmatprep.subr.bf16.mxu0 %v4153_v26 }
  0x35   :  { %4156 = vmatpush3.bf16.msra.mxu0 %v4153_v26 }
  0x36   :  { %4158 = vmatprep.subr.bf16.mxu0 %v4157_v52 }
  0x97   :  { %v95_v29 = vpop.permute.xlu0 %94 }
  0x98   :  { %vm99_vm0 = vcmp.eq.s32.totalorder %v92_v28, %v95_v29  ;;  %v3402_v29 = vld [vmem:[%s5434_s4 + $0x28] sm:$0xff] }
  0x99   :  { %3800 = vmatprep.mubr.msk.f32.mxu0 %vm99_vm0, %v4516_v30 }
  0x9b   :  { %v98_v31 = vpop.permute.xlu0 %97 }
  0x9c   :  { %vm100_vm1 = vcmp.eq.s32.totalorder %v92_v28, %v98_v31  ;;  %v3401_v28 = vld [vmem:[%s5434_s4 + $0x20] sm:$0xff] }
  0x9d   :  { %3801 = vmatmul.mubr.msk.f32.vlgmr.msra.gmra.mrb[0].mxu0 %vm100_vm1, %v4516_v30 }
  0x9e   :  { %4160 = vmatpush3.bf16.msra.mxu0 %v4157_v52  ;;  %v4853_v52 = vld [vmem:[%s5444_s3] sm:$0xff] }
  0x9f   :  { %4162 = vmatprep.subr.bf16.mxu0 %v4161_v55 }
  0xa2   :  { %4164 = vmatpush3.bf16.msra.mxu0 %v4161_v55  ;;  %v4858_v55 = vld [vmem:[%s5444_s3 + $0x8] sm:$0xff] }
  0xa3   :  { %4166 = vmatprep.subr.bf16.mxu0 %v4165_v58 }
 0x170   :  { %v3802_v33 = vpop.f32.mrb[0].mxu0 }
 0x171   :  { %v189_v35 = vpop.f32.mrb[1].mxu0  ;;  %v195_v37 = vadd.f32 %v3802_v33, %v122_v34  ;;  %v4191_v33 = vpack.c.bf16 %v3402_v29, %v3401_v28  ;;  %v3392_v34 = vld [vmem:[%s5443_s0] ss:$0 sm:$0xff] }
 0x172   :  { %v190_v36 = vadd.f32 %v189_v35, %v121_v32 }
 0x173   :  { %v204_v39 = vsel %vm200_vm2, %v195_v37, 0.0 }
 0x174   :  { %v201_v38 = vsel %vm200_vm2, %v190_v36, 0.0 }
 0x175   :  { %202 = vadd.xlane.f32.xlu1 %v201_v38  ;;  %v3403_v38 = vld [vmem:[%s5434_s4 + $0x30] sm:$0xff] }
 0x179   :  { %205 = vadd.xlane.f32.xlu1 %v204_v39  ;;  %v3404_v39 = vld [vmem:[%s5434_s4 + $0x38] sm:$0xff] }
 0x202   :  { %v203_v40 = vpop.xlane.xlu1 %202 }
 0x203   :  { %v208_v41 = vmul.f32 0.03125, %v203_v40 }
 0x205   :  { %v210_v42 = vsub.f32 %v190_v36, %v208_v41 }
 0x206   :  { %v206_v43 = vpop.xlane.xlu1 %205 }
 0x207   :  { %v209_v44 = vmul.f32 0.03125, %v206_v43  ;;  %v212_v45 = vmul.f32 %v210_v42, %v210_v42  ;;  %v4195_v43 = vpack.c.bf16 %v3404_v39, %v3403_v38 }
 0x209   :  { %v211_v46 = vsub.f32 %v195_v37, %v209_v44  ;;  %v214_v47 = vsel %vm200_vm2, %v212_v45, 0.0  ;;  %v3417_v44 = vld [vmem:[%s5438_s12 + $0x20] sm:$0xff]  ;;  %v3418_v45 = vld [vmem:[%s5438_s12 + $0x28] sm:$0xff] }
 0x20a   :  { %215 = vadd.xlane.f32.xlu0 %v214_v47  ;;  %v3419_v47 = vld [vmem:[%s5438_s12 + $0x30] sm:$0xff] }
 0x20b   :  { %v213_v48 = vmul.f32 %v211_v46, %v211_v46 }
 0x20d   :  { %v217_v49 = vsel %vm200_vm2, %v213_v48, 0.0  ;;  %v3420_v48 = vld [vmem:[%s5438_s12 + $0x38] sm:$0xff] }
 0x20e   :  { %218 = vadd.xlane.f32.xlu1 %v217_v49  ;;  %v4211_v49 = vpack.c.bf16 %v3420_v48, %v3419_v47 }
 0x297   :  { %v216_v59 = vpop.xlane.xlu0 %215 }
 0x298   :  { %v220_v60 = vmul.f32 0.03125, %v216_v59 }
 0x29a   :  { %v222_v61 = vadd.f32 1e-12, %v220_v60 }
 0x29b   :  { %v219_v62 = vpop.xlane.xlu1 %218 }
 0x29c   :  { %4423 = vrsqrt.f32 %v222_v61  ;;  %v221_v63 = vmul.f32 0.03125, %v219_v62 }
 0x29e   :  { %v223_v0 = vadd.f32 1e-12, %v221_v63 }
 0x2a0   :  { %4425 = vrsqrt.f32 %v223_v0  ;;  %v3422_v0 = vld [vmem:[%s5443_s0 + $0x1] ss:$0 sm:$0xff] }
 0x2a6   :  { %v4424_v1 = vpop.eup %4423 }
 0x2a7   :  { %v226_v3 = vmul.f32 %v4424_v1, %v210_v42 }
 0x2a9   :  { %v234_v5 = vmul.f32 %v3384_v2, %v226_v3 }
 0x2aa   :  { %v4426_v6 = vpop.eup %4425 }
 0x2ab   :  { %v4753_v7 = vadd.f32 %v3385_v4, %v234_v5  ;;  %v227_v8 = vmul.f32 %v4426_v6, %v211_v46  ;;  %v4207_v46 = vpack.c.bf16 %v3418_v45, %v3417_v44 }
 0x2ad   :  { %244 = vst.msk [vmem:[%s5403_s28] sm:$0xff] %vm200_vm2, %v4753_v7  ;;  %v235_v11 = vmul.f32 %v3384_v2, %v227_v8  ;;  %3811 = vmatprep.mubr.msk.f32.mxu0 %vm200_vm2, %v4753_v7 }
 0x2af   :  { %v4768_v12 = vadd.f32 %v3385_v4, %v235_v11 }
 0x2b1   :  { %245 = vst.msk [vmem:[%s5403_s28 + $0x8] sm:$0xff] %vm200_vm2, %v4768_v12  ;;  %3812 = vmatmul.mubr.msk.f32.vlgmr.msra.gmra.mrb[2].mxu0 %vm200_vm2, %v4768_v12 }
 0x2b2   :  { %4168 = vmatpush3.bf16.msra.mxu0 %v4165_v58  ;;  %3822 = vmatprep.mubr.msk.f32.mxu0 %vm200_vm2, %v4753_v7  ;;  %v3406_v58 = vld [vmem:[%s5439_s2 + $0x1] ss:$0 sm:$0xff] }
 0x2b3   :  { %4170 = vmatprep.subr.bf16.mxu0 %v4169_v13 }
 0x2b6   :  { %4172 = vmatpush3.bf16.msra.mxu0 %v4169_v13 }
 0x2b7   :  { %4174 = vmatprep.subr.bf16.mxu0 %v4173_v16 }
 0x2b9   :  { %3823 = vmatmul.mubr.msk.f32.vlgmr.msra.gmra.mrb[4].mxu0 %vm200_vm2, %v4768_v12 }
 0x2ba   :  { %4176 = vmatpush3.bf16.msra.mxu0 %v4173_v16  ;;  %3833 = vmatprep.mubr.msk.f32.mxu0 %vm200_vm2, %v4753_v7 }
 0x2bb   :  { %4178 = vmatprep.subr.bf16.mxu0 %v4177_v19 }
 0x2be   :  { %4180 = vmatpush3.bf16.msra.mxu0 %v4177_v19  ;;  %v3410_v19 = vld [vmem:[%s5435_s11 + $0x28] sm:$0xff] }
 0x2c1   :  { %3834 = vmatmul.mubr.msk.f32.vlgmr.msra.gmra.mrb[6].mxu0 %vm200_vm2, %v4768_v12 }
 0x384   :  { %v3813_v21 = vpop.f32.mrb[2].mxu0 }
 0x385   :  { %v331_v22 = vpop.f32.mrb[3].mxu0  ;;  %v337_v41 = vadd.f32 %v3813_v21, %v3386_v20 }
 0x386   :  { %v332_v23 = vadd.f32 %v3386_v20, %v331_v22  ;;  %v4199_v20 = vpack.c.bf16 %v3410_v19, %v3409_v18 }
 0x388   :  { %3840 = vmatprep.mubr.msk.f32.mxu1 %vm512_vm3, %v332_v23 }
 0x38c   :  { %v3824_v25 = vpop.f32.mrb[4].mxu0 }
 0x38d   :  { %v423_v26 = vadd.f32 %v3824_v25, %v3389_v24  ;;  %v417_v27 = vpop.f32.mrb[5].mxu0  ;;  %v3411_v25 = vld [vmem:[%s5435_s11 + $0x30] sm:$0xff] }
 0x38e   :  { %v418_v30 = vadd.f32 %v3389_v24, %v417_v27 }
 0x390   :  { %v4181_v32 = vpack.c.bf16 %v423_v26, %v418_v30  ;;  %v3412_v26 = vld [vmem:[%s5435_s11 + $0x38] sm:$0xff] }
 0x391   :  { %v4203_v29 = vpack.c.bf16 %v3412_v26, %v3411_v25 }
 0x392   :  { %4183 = vmatprep.subr.msk.bf16.mxu1 %vm4812_vm4, %v4181_v32 }
 0x393   :  { %4186 = vmatpush3.bf16.xpose.msk.msra.mxu1 %vm4812_vm4, %v4181_v32 }
 0x394   :  { %v3835_v35 = vpop.f32.mrb[6].mxu0  ;;  %4192 = vmatprep.subr.bf16.mxu1 %v4191_v33 }
 0x395   :  { %v509_v36 = vadd.f32 %v3835_v35, %v3392_v34  ;;  %v503_v37 = vpop.f32.mrb[7].mxu0 }
 0x396   :  { %v504_v40 = vadd.f32 %v3392_v34, %v503_v37  ;;  %v3414_v34 = vld [vmem:[%s5440_s8 + $0x1] ss:$0 sm:$0xff] }
 0x398   :  { %v4187_v42 = vpack.c.bf16 %v509_v36, %v504_v40 }
 0x39a   :  { %3841 = vmatmul.mubr.msk.f32.vlgmr.msra.gmra.mrb[0].mxu1 %vm512_vm3, %v337_v41  ;;  %4188 = vmatprep.subr.bf16.mxu0 %v4187_v42 }
 0x39b   :  { %4190 = vmatpush3.bf16.msra.mxu0 %v4187_v42  ;;  %4194 = vmatpush3.bf16.msra.mxu1 %v4191_v33 }
 0x39c   :  { %3858 = vmatprep.mubr.msk.f32.mxu1 %vm200_vm2, %v4753_v7  ;;  %4196 = vmatprep.subr.bf16.mxu1 %v4195_v43 }
 0x39d   :  { %4200 = vmatprep.subr.bf16.mxu0 %v4199_v20 }
 0x39f   :  { %4198 = vmatpush3.bf16.msra.mxu1 %v4195_v43 }
 0x3a0   :  { %4208 = vmatprep.subr.bf16.mxu1 %v4207_v46 }
 0x3a2   :  { %3859 = vmatmul.mubr.msk.f32.vlgmr.msra.gmra.mrb[2].mxu1 %vm200_vm2, %v4768_v12 }
 0x3a3   :  { %4210 = vmatpush3.bf16.msra.mxu1 %v4207_v46  ;;  %3880 = vmatprep.mubr.msk.f32.mxu1 %vm200_vm2, %v4753_v7 }
 0x3a4   :  { %4212 = vmatprep.subr.bf16.mxu1 %v4211_v49 }
 0x3a7   :  { %4214 = vmatpush3.bf16.msra.mxu1 %v4211_v49 }
 0x3aa   :  { %3881 = vmatmul.mubr.msk.f32.vlgmr.msra.gmra.mrb[4].mxu1 %vm200_vm2, %v4768_v12 }
 0x46d   :  { %v3842_v50 = vpop.f32.mrb[0].mxu1 }
 0x46e   :  { %v591_v51 = vpop.f32.mrb[1].mxu1  ;;  %v601_v53 = vmul.f32 0.25, %v3842_v50 }
 0x46f   :  { %v600_v54 = vmul.f32 0.25, %v591_v51 }
 0x470   :  { %v603_v59 = vadd.f32 %v601_v53, %v4858_v55 }
 0x471   :  { %v602_v56 = vadd.f32 %v600_v54, %v4853_v52 }
 0x472   :  { %v607_v63 = vsel %vm512_vm3, %v603_v59, -inf }
 0x473   :  { %v604_v57 = vsel %vm512_vm3, %v602_v56, -inf }
 0x474   :  { %605 = vmax.xlane.f32.xlu1 %v604_v57 }
 0x475   :  { %v3860_v60 = vpop.f32.mrb[2].mxu1 }
 0x476   :  { %v794_v61 = vadd.f32 %v3860_v60, %v3406_v58  ;;  %v788_v62 = vpop.f32.mrb[3].mxu1  ;;  %v3431_v60 = vld [vmem:[%s5445_s6 + $0x10] sm:$0xff] }
 0x477   :  { %v789_v30 = vadd.f32 %v3406_v58, %v788_v62 }
 0x478   :  { %608 = vmax.xlane.f32.xlu1 %v607_v63 }
 0x47d   :  { %v3882_v1 = vpop.f32.mrb[4].mxu1 }
 0x47e   :  { %v970_v2 = vadd.f32 %v3882_v1, %v3422_v0  ;;  %v964_v3 = vpop.f32.mrb[5].mxu1 }
 0x47f   :  { %v965_v4 = vadd.f32 %v3422_v0, %v964_v3 }
 0x481   :  { %v4221_v5 = vpack.c.bf16 %v970_v2, %v965_v4 }
 0x501   :  { %v606_v6 = vpop.xlane.xlu1 %605 }
 0x502   :  { %v610_v8 = vsub.f32 %v602_v56, %v606_v6  ;;  %v708_v6 = vld [vmem:[%s5445_s6 + $0x8] sm:$0xff] }
 0x504   :  { %v612_v9 = vmul.f32 1.442695, %v610_v8 }
 0x505   :  { %v609_v10 = vpop.xlane.xlu1 %608 }
 0x506   :  { %4427 = vpow2.f32 %v612_v9  ;;  %v611_v11 = vsub.f32 %v603_v59, %v609_v10 }
 0x508   :  { %v614_v13 = vmul.f32 1.442695, %v611_v11  ;;  %v3437_v11 = vld [vmem:[%s5446_s9] ss:$0 sm:$0xff] }
 0x50a   :  { %4429 = vpow2.f32 %v614_v13 }
 0x510   :  { %v4428_v14 = vpop.eup %4427 }
 0x511   :  { %v616_v15 = vsel %vm512_vm3, %v4428_v14, 0.0 }
 0x512   :  { %617 = vadd.xlane.f32.xlu1 %v616_v15 }
 0x514   :  { %v4430_v16 = vpop.eup %4429 }
 0x515   :  { %v619_v17 = vsel %vm512_vm3, %v4430_v16, 0.0 }
 0x516   :  { %620 = vadd.xlane.f32.xlu1 %v619_v17 }
 0x59f   :  { %v618_v21 = vpop.xlane.xlu1 %617 }
 0x5a0   :  { %4431 = vrcp.f32 %v618_v21 }
 0x5a3   :  { %v621_v22 = vpop.xlane.xlu1 %620 }
 0x5a4   :  { %4433 = vrcp.f32 %v621_v22 }
 0x5aa   :  { %v4432_v23 = vpop.eup %4431 }
 0x5ab   :  { %v624_v24 = vmul.f32 %v4432_v23, %v4428_v14 }
 0x5ad   :  { %3847 = vmatprep.mubr.msk.f32.mxu0 %vm512_vm3, %v624_v24 }
 0x5ae   :  { %v4434_v27 = vpop.eup %4433 }
 0x5af   :  { %v625_v28 = vmul.f32 %v4434_v27, %v4430_v16 }
 0x5b1   :  { %3848 = vmatmul.mubr.msk.f32.vlgmr.msra.gmra.mrb[8].mxu0 %vm512_vm3, %v625_v28 }
 0x5b2   :  { %4202 = vmatpush3.bf16.msra.mxu0 %v4199_v20  ;;  %3869 = vmatprep.mubr.msk.f32.mxu0 %vm200_vm2, %v4753_v7 }
 0x5b3   :  { %4204 = vmatprep.subr.bf16.mxu0 %v4203_v29 }
 0x5b6   :  { %4206 = vmatpush3.bf16.msra.mxu0 %v4203_v29 }
 0x5b9   :  { %3870 = vmatmul.mubr.msk.f32.vlgmr.msra.gmra.mrb[10].mxu0 %vm200_vm2, %v4768_v12 }
 0x5ba   :  { %3887 = vmatprep.mubr.msk.f32.mxu0 %vm512_vm3, %v789_v30  ;;  %v1388_v30 = vld [vmem:[%s5390_s15 + $0x8] sm:$0xff] }
 0x684   :  { %v3849_v32 = vpop.f32.mrb[8].mxu0 }
 0x685   :  { %v698_v33 = vpop.f32.mrb[9].mxu0 }
 0x68c   :  { %v3871_v35 = vpop.f32.mrb[10].mxu0 }
 0x68d   :  { %v882_v36 = vadd.f32 %v3871_v35, %v3414_v34  ;;  %v876_v37 = vpop.f32.mrb[11].mxu0 }
 0x68e   :  { %v877_v38 = vadd.f32 %v3414_v34, %v876_v37  ;;  %v1390_v34 = vld [vmem:[%s5390_s15 + $0x18] sm:$0xff] }
 0x690   :  { %v4215_v39 = vpack.c.bf16 %v882_v36, %v877_v38 }
 0x692   :  { %4217 = vmatprep.subr.msk.bf16.mxu0 %vm4812_vm4, %v4215_v39 }
 0x693   :  { %4220 = vmatpush3.bf16.xpose.msk.msra.mxu0 %vm4812_vm4, %v4215_v39 }
 0x694   :  { %4222 = vmatprep.subr.bf16.mxu0 %v4221_v5 }
 0x69a   :  { %3888 = vmatmul.mubr.msk.f32.vlgmr.msra.gmra.mrb[12].mxu0 %vm512_vm3, %v794_v61  ;;  %v3432_v61 = vld [vmem:[%s5445_s6 + $0x18] sm:$0xff] }
 0x69b   :  { %4224 = vmatpush3.bf16.msra.mxu0 %v4221_v5  ;;  %v4225_v62 = vpack.c.bf16 %v3432_v61, %v3431_v60  ;;  %v707_v5 = vld [vmem:[%s5445_s6] sm:$0xff]  ;;  %v1502_v61 = vld [vmem:[%s5392_s17 + $0x28] sm:$0xff] }
 0x69c   :  { %v4229_v8 = vpack.c.bf16 %v708_v6, %v707_v5 }
 0x69d   :  { %4226 = vmatprep.subr.bf16.mxu0 %v4225_v62 }
 0x76d   :  { %v3889_v40 = vpop.f32.mrb[12].mxu0 }
 0x76e   :  { %v1051_v41 = vpop.f32.mrb[13].mxu0  ;;  %v1061_v42 = vmul.f32 0.25, %v3889_v40 }
 0x76f   :  { %v1060_v43 = vmul.f32 0.25, %v1051_v41 }
 0x770   :  { %v1063_v46 = vadd.f32 %v1061_v42, %v4858_v55 }
 0x771   :  { %v1062_v44 = vadd.f32 %v1060_v43, %v4853_v52  ;;  %v3438_v43 = vld [vmem:[%s5388_s13] ss:$0 sm:$0xff] }
 0x772   :  { %v1067_v47 = vsel %vm512_vm3, %v1063_v46, -inf }
 0x773   :  { %v1064_v45 = vsel %vm512_vm3, %v1062_v44, -inf }
 0x774   :  { %1065 = vmax.xlane.f32.xlu1 %v1064_v45 }
 0x778   :  { %1068 = vmax.xlane.f32.xlu1 %v1067_v47  ;;  %v3439_v47 = vld [vmem:[%s5389_s14] ss:$0 sm:$0xff] }
 0x801   :  { %v1066_v48 = vpop.xlane.xlu1 %1065 }
 0x802   :  { %v1070_v49 = vsub.f32 %v1062_v44, %v1066_v48 }
 0x804   :  { %v1072_v50 = vmul.f32 1.442695, %v1070_v49 }
 0x805   :  { %v1069_v51 = vpop.xlane.xlu1 %1068 }
 0x806   :  { %4435 = vpow2.f32 %v1072_v50  ;;  %v1071_v53 = vsub.f32 %v1063_v46, %v1069_v51 }
 0x808   :  { %v1074_v54 = vmul.f32 1.442695, %v1071_v53  ;;  %v1497_v53 = vld [vmem:[%s5392_s17] sm:$0xff] }
 0x80a   :  { %4437 = vpow2.f32 %v1074_v54  ;;  %v1498_v54 = vld [vmem:[%s5392_s17 + $0x8] sm:$0xff] }
 0x810   :  { %v4436_v56 = vpop.eup %4435 }
 0x811   :  { %v1076_v57 = vsel %vm512_vm3, %v4436_v56, 0.0 }
 0x812   :  { %1077 = vadd.xlane.f32.xlu1 %v1076_v57  ;;  %v1499_v57 = vld [vmem:[%s5392_s17 + $0x10] sm:$0xff] }
 0x814   :  { %v4438_v58 = vpop.eup %4437 }
 0x815   :  { %v1079_v59 = vsel %vm512_vm3, %v4438_v58, 0.0 }
 0x816   :  { %1080 = vadd.xlane.f32.xlu0 %v1079_v59  ;;  %v1501_v59 = vld [vmem:[%s5392_s17 + $0x20] sm:$0xff] }
 0x89f   :  { %v1078_v63 = vpop.xlane.xlu1 %1077 }
 0x8a0   :  { %4439 = vrcp.f32 %v1078_v63  ;;  %v1503_v63 = vld [vmem:[%s5392_s17 + $0x30] sm:$0xff] }
 0x8a3   :  { %v1081_v0 = vpop.xlane.xlu0 %1080 }
 0x8a4   :  { %4441 = vrcp.f32 %v1081_v0  ;;  %v1504_v0 = vld [vmem:[%s5392_s17 + $0x38] sm:$0xff] }
 0x8aa   :  { %v4440_v1 = vpop.eup %4439 }
 0x8ab   :  { %v1084_v2 = vmul.f32 %v4440_v1, %v4436_v56  ;;  %v4241_v56 = vpack.c.bf16 %v1498_v54, %v1497_v53  ;;  %v4253_v1 = vpack.c.bf16 %v1504_v0, %v1503_v63  ;;  %v3453_v53 = vld [vmem:[%s5434_s4 + $0x58] sm:$0xff] }
 0x8ad   :  { %3894 = vmatprep.mubr.msk.f32.mxu0 %vm512_vm3, %v1084_v2  ;;  %v3440_v2 = vld [vmem:[%s5391_s16] ss:$0 sm:$0xff] }
 0x8ae   :  { %v4442_v3 = vpop.eup %4441 }
 0x8af   :  { %v1085_v4 = vmul.f32 %v4442_v3, %v4438_v58  ;;  %v1500_v58 = vld [vmem:[%s5392_s17 + $0x18] sm:$0xff] }
 0x8b0   :  { %v4245_v60 = vpack.c.bf16 %v1500_v58, %v1499_v57  ;;  %v3469_v57 = vld [vmem:[%s5438_s12 + $0x58] sm:$0xff] }
 0x8b1   :  { %3895 = vmatmul.mubr.msk.f32.vlgmr.msra.gmra.mrb[14].mxu0 %vm512_vm3, %v1085_v4 }
 0x8b2   :  { %4228 = vmatpush3.bf16.msra.mxu0 %v4225_v62  ;;  %v4249_v62 = vpack.c.bf16 %v1502_v61, %v1501_v59  ;;  %v3458_v59 = vld [vmem:[%s5435_s11 + $0x40] sm:$0xff] }
 0x8b3   :  { %4230 = vmatprep.subr.bf16.mxu0 %v4229_v8 }
 0x984   :  { %v3896_v9 = vpop.f32.mrb[14].mxu0 }
 0x985   :  { %v1158_v10 = vpop.f32.mrb[15].mxu0 }
 0x986   :  { %3901 = vmatprep.mubr.msk.f32.mxu0 %vm512_vm3, %v1158_v10 }
 0x987   :  { %3902 = vmatmul.mubr.msk.f32.vlgmr.msra.gmra.mrb[16].mxu0 %vm512_vm3, %v3896_v9 }
 0x988   :  { %4232 = vmatpush3.bf16.msra.mxu0 %v4229_v8  ;;  %3908 = vmatprep.mubr.msk.f32.mxu0 %vm512_vm3, %v698_v33  ;;  %v1389_v33 = vld [vmem:[%s5390_s15 + $0x10] sm:$0xff] }
 0x989   :  { %v4237_v35 = vpack.c.bf16 %v1390_v34, %v1389_v33  ;;  %4242 = vmatprep.subr.bf16.mxu0 %v4241_v56 }
 0x98f   :  { %3909 = vmatmul.mubr.msk.f32.vlgmr.msra.gmra.mrb[16].mxu0 %vm512_vm3, %v3849_v32 }
 0x990   :  { %4244 = vmatpush3.bf16.msra.mxu0 %v4241_v56  ;;  %v3468_v56 = vld [vmem:[%s5438_s12 + $0x50] sm:$0xff] }
 0x991   :  { %4246 = vmatprep.subr.bf16.mxu0 %v4245_v60  ;;  %v4277_v58 = vpack.c.bf16 %v3469_v57, %v3468_v56  ;;  %v3487_v57 = vld [vmem:[%s5439_s2 + $0x3] ss:$0 sm:$0xff] }
 0x994   :  { %4248 = vmatpush3.bf16.msra.mxu0 %v4245_v60  ;;  %v3459_v60 = vld [vmem:[%s5435_s11 + $0x48] sm:$0xff] }
 0x995   :  { %4250 = vmatprep.subr.bf16.mxu0 %v4249_v62  ;;  %v4265_v61 = vpack.c.bf16 %v3459_v60, %v3458_v59 }
 0x998   :  { %4252 = vmatpush3.bf16.msra.mxu0 %v4249_v62 }
 0x999   :  { %4254 = vmatprep.subr.bf16.mxu0 %v4253_v1 }
 0x99c   :  { %4256 = vmatpush3.bf16.msra.mxu0 %v4253_v1 }
 0xa62   :  { %v3910_v13 = vpop.f32.mrb[16].mxu0 }
 0xa63   :  { %v1340_v14 = vadd.f32 %v3910_v13, %v3437_v11  ;;  %v1323_v15 = vpop.f32.mrb[17].mxu0 }
 0xa64   :  { %v1339_v16 = vadd.f32 %v3437_v11, %v1323_v15 }
 0xa65   :  { %v1342_v17 = vadd.f32 %v1340_v14, %v4768_v12 }
 0xa66   :  { %v1341_v18 = vadd.f32 %v1339_v16, %v4753_v7  ;;  %v1387_v7 = vld [vmem:[%s5390_s15] sm:$0xff] }
 0xa67   :  { %v1348_v19 = vsel %vm200_vm2, %v1342_v17, 0.0  ;;  %v4233_v32 = vpack.c.bf16 %v1388_v30, %v1387_v7 }
 0xa68   :  { %1349 = vadd.xlane.f32.xlu0 %v1348_v19  ;;  %v1345_v20 = vsel %vm200_vm2, %v1341_v18, 0.0 }
 0xa69   :  { %1346 = vadd.xlane.f32.xlu1 %v1345_v20  ;;  %4234 = vmatprep.subr.bf16.mxu1 %v4233_v32 }
 0xa6a   :  { %4236 = vmatpush3.bf16.msra.mxu1 %v4233_v32 }
 0xa6b   :  { %4238 = vmatprep.subr.bf16.mxu1 %v4237_v35 }
 0xa6e   :  { %4240 = vmatpush3.bf16.msra.mxu1 %v4237_v35 }
 0xaf5   :  { %v1350_v21 = vpop.xlane.xlu0 %1349 }
 0xaf6   :  { %v1352_v22 = vmul.f32 0.03125, %v1350_v21  ;;  %v1347_v23 = vpop.xlane.xlu1 %1346 }
 0xaf7   :  { %v1351_v24 = vmul.f32 0.03125, %v1347_v23 }
 0xaf8   :  { %v1354_v25 = vsub.f32 %v1342_v17, %v1352_v22 }
 0xaf9   :  { %v1353_v26 = vsub.f32 %v1341_v18, %v1351_v24 }
 0xafa   :  { %v1356_v27 = vmul.f32 %v1354_v25, %v1354_v25 }
 0xafb   :  { %v1355_v28 = vmul.f32 %v1353_v26, %v1353_v26 }
 0xafc   :  { %v1360_v29 = vsel %vm200_vm2, %v1356_v27, 0.0  ;;  %v3443_v27 = vld [vmem:[%s5393_s18] ss:$0 sm:$0xff] }
 0xafd   :  { %1361 = vadd.xlane.f32.xlu0 %v1360_v29  ;;  %v1357_v12 = vsel %vm200_vm2, %v1355_v28, 0.0 }
 0xafe   :  { %1358 = vadd.xlane.f32.xlu1 %v1357_v12 }
 0xb8a   :  { %v1362_v36 = vpop.xlane.xlu0 %1361 }
 0xb8b   :  { %v1364_v37 = vmul.f32 0.03125, %v1362_v36  ;;  %v1359_v38 = vpop.xlane.xlu1 %1358 }
 0xb8c   :  { %v1363_v39 = vmul.f32 0.03125, %v1359_v38 }
 0xb8d   :  { %v1366_v40 = vadd.f32 1e-12, %v1364_v37 }
 0xb8e   :  { %v1365_v41 = vadd.f32 1e-12, %v1363_v39 }
 0xb8f   :  { %4443 = vrsqrt.f32 %v1366_v40 }
 0xb90   :  { %4445 = vrsqrt.f32 %v1365_v41 }
 0xb99   :  { %v4444_v42 = vpop.eup %4443 }
 0xb9a   :  { %v4446_v44 = vpop.eup %4445  ;;  %v1370_v45 = vmul.f32 %v4444_v42, %v1354_v25 }
 0xb9b   :  { %v1369_v46 = vmul.f32 %v4446_v44, %v1353_v26 }
 0xb9c   :  { %v1378_v48 = vmul.f32 %v3438_v43, %v1370_v45  ;;  %v3450_v45 = vld [vmem:[%s5434_s4 + $0x40] sm:$0xff] }
 0xb9d   :  { %v1377_v49 = vmul.f32 %v3438_v43, %v1369_v46  ;;  %v3451_v46 = vld [vmem:[%s5434_s4 + $0x48] sm:$0xff] }
 0xb9e   :  { %v1386_v51 = vadd.f32 %v3439_v47, %v1378_v48  ;;  %v3466_v48 = vld [vmem:[%s5438_s12 + $0x40] sm:$0xff] }
 0xb9f   :  { %v1385_v50 = vadd.f32 %v3439_v47, %v1377_v49  ;;  %v4257_v47 = vpack.c.bf16 %v3451_v46, %v3450_v45  ;;  %v3467_v49 = vld [vmem:[%s5438_s12 + $0x48] sm:$0xff]  ;;  %v3501_v45 = vld [vmem:[%s5438_s12 + $0x78] sm:$0xff] }
 0xba1   :  { %3919 = vmatprep.mubr.msk.f32.mxu1 %vm200_vm2, %v1385_v50  ;;  %4258 = vmatprep.subr.bf16.mxu1 %v4257_v47 }
 0xba2   :  { %3920 = vmatmul.mubr.msk.f32.vlgmr.msra.gmra.mrb[6].mxu1 %vm200_vm2, %v1386_v51 }
 0xba3   :  { %4260 = vmatpush3.bf16.msra.mxu1 %v4257_v47 }
 0xc75   :  { %v3921_v3 = vpop.f32.mrb[6].mxu1 }
 0xc76   :  { %v1476_v4 = vadd.f32 %v3921_v3, %v3440_v2  ;;  %v1470_v5 = vpop.f32.mrb[7].mxu1 }
 0xc77   :  { %v1471_v6 = vadd.f32 %v3440_v2, %v1470_v5  ;;  %v3446_v5 = vld [vmem:[%s5394_s19] ss:$0 sm:$0xff] }
 0xc78   :  { %v1482_v8 = vmul.f32 0.044715, %v1476_v4  ;;  %v1480_v24 = vmul.f32 0.5, %v1476_v4 }
 0xc79   :  { %v1481_v9 = vmul.f32 0.044715, %v1471_v6  ;;  %v1479_v22 = vmul.f32 0.5, %v1471_v6 }
 0xc7a   :  { %v1484_v10 = vmul.f32 %v1482_v8, %v1476_v4 }
 0xc7b   :  { %v1483_v11 = vmul.f32 %v1481_v9, %v1471_v6  ;;  %v3447_v9 = vld [vmem:[%s5395_s20] ss:$0 sm:$0xff] }
 0xc7c   :  { %v1486_v13 = vmul.f32 %v1484_v10, %v1476_v4 }
 0xc7d   :  { %v1485_v14 = vmul.f32 %v1483_v11, %v1471_v6 }
 0xc7e   :  { %v1488_v15 = vadd.f32 %v1486_v13, %v1476_v4 }
 0xc7f   :  { %v1487_v16 = vadd.f32 %v1485_v14, %v1471_v6  ;;  %v3460_v14 = vld [vmem:[%s5435_s11 + $0x50] sm:$0xff] }
 0xc80   :  { %v1490_v17 = vmul.f32 0.7978846, %v1488_v15  ;;  %v3461_v15 = vld [vmem:[%s5435_s11 + $0x58] sm:$0xff] }
 0xc81   :  { %v1489_v18 = vmul.f32 0.7978846, %v1487_v16 }
 0xc82   :  { %4447 = vtanh.f32 %v1490_v17 }
 0xc83   :  { %4449 = vtanh.f32 %v1489_v18  ;;  %v4269_v18 = vpack.c.bf16 %v3461_v15, %v3460_v14  ;;  %v3490_v15 = vld [vmem:[%s5435_s11 + $0x60] sm:$0xff] }
 0xc8c   :  { %v4448_v19 = vpop.eup %4447 }
 0xc8d   :  { %v4450_v20 = vpop.eup %4449  ;;  %v1494_v21 = vadd.f32 1.0, %v4448_v19  ;;  %v3471_v19 = vld [vmem:[%s5443_s0 + $0x2] ss:$0 sm:$0xff] }
 0xc8e   :  { %v1493_v23 = vadd.f32 1.0, %v4450_v20  ;;  %v3455_v20 = vld [vmem:[%s5439_s2 + $0x2] ss:$0 sm:$0xff] }
 0xc8f   :  { %v1496_v26 = vmul.f32 %v1494_v21, %v1480_v24 }
 0xc90   :  { %v1495_v25 = vmul.f32 %v1493_v23, %v1479_v22 }
 0xc92   :  { %3938 = vmatprep.mubr.msk.f32.mxu0 %vm1512_vm5, %v1495_v25 }
 0xc93   :  { %3939 = vmatmul.mubr.msk.f32.vlgmr.msra.gmra.mrb[18].mxu0 %vm1512_vm5, %v1496_v26 }
 0xd66   :  { %v3940_v28 = vpop.f32.mrb[18].mxu0 }
 0xd67   :  { %v1591_v29 = vadd.f32 %v3940_v28, %v3443_v27  ;;  %v1585_v12 = vpop.f32.mrb[19].mxu0 }
 0xd68   :  { %v1586_v7 = vadd.f32 %v3443_v27, %v1585_v12 }
 0xd69   :  { %v1595_v30 = vadd.f32 %v1591_v29, %v1386_v51  ;;  %v3452_v51 = vld [vmem:[%s5434_s4 + $0x50] sm:$0xff]  ;;  %v3463_v29 = vld [vmem:[%s5440_s8 + $0x2] ss:$0 sm:$0xff] }
 0xd6a   :  { %v1594_v32 = vadd.f32 %v1586_v7, %v1385_v50  ;;  %v4273_v50 = vpack.c.bf16 %v3467_v49, %v3466_v48  ;;  %v4261_v54 = vpack.c.bf16 %v3453_v53, %v3452_v51 }
 0xd6b   :  { %v1601_v33 = vsel %vm200_vm2, %v1595_v30, 0.0 }
 0xd6c   :  { %1602 = vadd.xlane.f32.xlu0 %v1601_v33  ;;  %v1598_v34 = vsel %vm200_vm2, %v1594_v32, 0.0  ;;  %4274 = vmatprep.subr.bf16.mxu0 %v4273_v50  ;;  %v3483_v33 = vld [vmem:[%s5434_s4 + $0x68] sm:$0xff] }
 0xd6d   :  { %1599 = vadd.xlane.f32.xlu1 %v1598_v34  ;;  %4276 = vmatpush3.bf16.msra.mxu0 %v4273_v50 }
 0xd6e   :  { %4262 = vmatprep.subr.bf16.mxu1 %v4261_v54  ;;  %4278 = vmatprep.subr.bf16.mxu0 %v4277_v58 }
 0xd6f   :  { %4264 = vmatpush3.bf16.msra.mxu1 %v4261_v54 }
 0xd70   :  { %4266 = vmatprep.subr.bf16.mxu1 %v4265_v61 }
 0xd71   :  { %4280 = vmatpush3.bf16.msra.mxu0 %v4277_v58 }
 0xdf9   :  { %v1603_v35 = vpop.xlane.xlu0 %1602 }
 0xdfa   :  { %v1605_v36 = vmul.f32 0.03125, %v1603_v35  ;;  %v1600_v37 = vpop.xlane.xlu1 %1599 }
 0xdfb   :  { %v1604_v38 = vmul.f32 0.03125, %v1600_v37  ;;  %v3484_v37 = vld [vmem:[%s5434_s4 + $0x70] sm:$0xff] }
 0xdfc   :  { %v1607_v39 = vsub.f32 %v1595_v30, %v1605_v36 }
 0xdfd   :  { %v1606_v40 = vsub.f32 %v1594_v32, %v1604_v38  ;;  %v3482_v32 = vld [vmem:[%s5434_s4 + $0x60] sm:$0xff]  ;;  %v3485_v38 = vld [vmem:[%s5434_s4 + $0x78] sm:$0xff] }
 0xdfe   :  { %v1609_v41 = vmul.f32 %v1607_v39, %v1607_v39  ;;  %v4291_v36 = vpack.c.bf16 %v3483_v33, %v3482_v32 }
 0xdff   :  { %v1608_v42 = vmul.f32 %v1606_v40, %v1606_v40 }
 0xe00   :  { %v1613_v43 = vsel %vm200_vm2, %v1609_v41, 0.0  ;;  %v3498_v41 = vld [vmem:[%s5438_s12 + $0x60] sm:$0xff] }
 0xe01   :  { %1614 = vadd.xlane.f32.xlu0 %v1613_v43  ;;  %v1610_v44 = vsel %vm200_vm2, %v1608_v42, 0.0  ;;  %v3499_v42 = vld [vmem:[%s5438_s12 + $0x68] sm:$0xff] }
 0xe02   :  { %1611 = vadd.xlane.f32.xlu1 %v1610_v44  ;;  %v4307_v43 = vpack.c.bf16 %v3499_v42, %v3498_v41  ;;  %v3500_v44 = vld [vmem:[%s5438_s12 + $0x70] sm:$0xff] }
 0xe03   :  { %v4311_v46 = vpack.c.bf16 %v3501_v45, %v3500_v44 }
 0xe8e   :  { %v1615_v62 = vpop.xlane.xlu0 %1614 }
 0xe8f   :  { %v1617_v63 = vmul.f32 0.03125, %v1615_v62  ;;  %v1612_v0 = vpop.xlane.xlu1 %1611 }
 0xe90   :  { %v1616_v1 = vmul.f32 0.03125, %v1612_v0 }
 0xe91   :  { %v1619_v2 = vadd.f32 1e-12, %v1617_v63 }
 0xe92   :  { %v1618_v3 = vadd.f32 1e-12, %v1616_v1 }
 0xe93   :  { %4451 = vrsqrt.f32 %v1619_v2 }
 0xe94   :  { %4453 = vrsqrt.f32 %v1618_v3 }
 0xe9d   :  { %v4452_v4 = vpop.eup %4451 }
 0xe9e   :  { %v4454_v6 = vpop.eup %4453  ;;  %v1623_v8 = vmul.f32 %v4452_v4, %v1607_v39 }
 0xe9f   :  { %v1622_v10 = vmul.f32 %v4454_v6, %v1606_v40  ;;  %v4295_v40 = vpack.c.bf16 %v3485_v38, %v3484_v37 }
 0xea0   :  { %v1631_v11 = vmul.f32 %v3446_v5, %v1623_v8 }
 0xea1   :  { %v1630_v13 = vmul.f32 %v3446_v5, %v1622_v10 }
 0xea2   :  { %v5030_v16 = vadd.f32 %v3447_v9, %v1631_v11 }
 0xea3   :  { %v5032_v17 = vadd.f32 %v3447_v9, %v1630_v13 }
 0xea4   :  { %3449 = vst.msk [vmem:[%s5403_s28 + $0x18] sm:$0xff] %vm200_vm2, %v5030_v16 }
 0xea5   :  { %3448 = vst.msk [vmem:[%s5403_s28 + $0x10] sm:$0xff] %vm200_vm2, %v5032_v17  ;;  %3949 = vmatprep.mubr.msk.f32.mxu1 %vm200_vm2, %v5032_v17  ;;  %3971 = vmatprep.mubr.msk.f32.mxu0 %vm200_vm2, %v5032_v17 }
 0xea6   :  { %3950 = vmatmul.mubr.msk.f32.vlgmr.msra.gmra.mrb[8].mxu1 %vm200_vm2, %v5030_v16  ;;  %3972 = vmatmul.mubr.msk.f32.vlgmr.msra.gmra.mrb[20].mxu0 %vm200_vm2, %v5030_v16 }
 0xea7   :  { %4268 = vmatpush3.bf16.msra.mxu1 %v4265_v61  ;;  %3960 = vmatprep.mubr.msk.f32.mxu1 %vm200_vm2, %v5032_v17  ;;  %v3503_v61 = vld [vmem:[%s5443_s0 + $0x3] ss:$0 sm:$0xff] }
 0xea8   :  { %4270 = vmatprep.subr.bf16.mxu1 %v4269_v18 }
 0xeab   :  { %4272 = vmatpush3.bf16.msra.mxu1 %v4269_v18  ;;  %v3491_v18 = vld [vmem:[%s5435_s11 + $0x68] sm:$0xff] }
 0xeae   :  { %3961 = vmatmul.mubr.msk.f32.vlgmr.msra.gmra.mrb[10].mxu1 %vm200_vm2, %v5030_v16 }
 0xf79   :  { %v3951_v21 = vpop.f32.mrb[8].mxu1  ;;  %v3973_v22 = vpop.f32.mrb[20].mxu0 }
 0xf7a   :  { %v1910_v23 = vadd.f32 %v3973_v22, %v3471_v19  ;;  %v1728_v24 = vpop.f32.mrb[9].mxu1  ;;  %v1904_v25 = vpop.f32.mrb[21].mxu0  ;;  %v1734_v39 = vadd.f32 %v3951_v21, %v3455_v20 }
 0xf7b   :  { %v1729_v26 = vadd.f32 %v3455_v20, %v1728_v24  ;;  %v1905_v27 = vadd.f32 %v3471_v19, %v1904_v25  ;;  %v4299_v19 = vpack.c.bf16 %v3491_v18, %v3490_v15  ;;  %v3493_v24 = vld [vmem:[%s5435_s11 + $0x78] sm:$0xff] }
 0xf7d   :  { %v4287_v28 = vpack.c.bf16 %v1910_v23, %v1905_v27  ;;  %3978 = vmatprep.mubr.msk.f32.mxu1 %vm512_vm3, %v1729_v26  ;;  %v3492_v23 = vld [vmem:[%s5435_s11 + $0x70] sm:$0xff]  ;;  %s5449_s11 = sld [smem:[#allocation18_spill]] }
 0xf7f   :  { %4288 = vmatprep.subr.bf16.mxu0 %v4287_v28 }
 0xf80   :  { %4290 = vmatpush3.bf16.msra.mxu0 %v4287_v28  ;;  %v4303_v28 = vpack.c.bf16 %v3493_v24, %v3492_v23 }
 0xf81   :  { %v3962_v12 = vpop.f32.mrb[10].mxu1  ;;  %4300 = vmatprep.subr.bf16.mxu0 %v4299_v19 }
 0xf82   :  { %v1822_v7 = vadd.f32 %v3962_v12, %v3463_v29  ;;  %v1816_v30 = vpop.f32.mrb[11].mxu1 }
 0xf83   :  { %v1817_v34 = vadd.f32 %v3463_v29, %v1816_v30  ;;  %v3495_v30 = vld [vmem:[%s5440_s8 + $0x3] ss:$0 sm:$0xff] }
 0xf85   :  { %v4281_v35 = vpack.c.bf16 %v1822_v7, %v1817_v34 }
 0xf87   :  { %4283 = vmatprep.subr.msk.bf16.mxu1 %vm4812_vm4, %v4281_v35 }
 0xf88   :  { %4286 = vmatpush3.bf16.xpose.msk.msra.mxu1 %vm4812_vm4, %v4281_v35 }
 0xf89   :  { %4292 = vmatprep.subr.bf16.mxu1 %v4291_v36 }
 0xf8f   :  { %3979 = vmatmul.mubr.msk.f32.vlgmr.msra.gmra.mrb[12].mxu1 %vm512_vm3, %v1734_v39 }
 0xf90   :  { %4294 = vmatpush3.bf16.msra.mxu1 %v4291_v36  ;;  %3996 = vmatprep.mubr.msk.f32.mxu1 %vm200_vm2, %v5032_v17 }
 0xf91   :  { %4296 = vmatprep.subr.bf16.mxu1 %v4295_v40 }
 0xf94   :  { %4298 = vmatpush3.bf16.msra.mxu1 %v4295_v40 }
 0xf95   :  { %4308 = vmatprep.subr.bf16.mxu1 %v4307_v43 }
 0xf97   :  { %3997 = vmatmul.mubr.msk.f32.vlgmr.msra.gmra.mrb[14].mxu1 %vm200_vm2, %v5030_v16 }
 0xf98   :  { %4310 = vmatpush3.bf16.msra.mxu1 %v4307_v43  ;;  %4018 = vmatprep.mubr.msk.f32.mxu1 %vm200_vm2, %v5032_v17 }
 0xf99   :  { %4312 = vmatprep.subr.bf16.mxu1 %v4311_v46 }
 0xf9c   :  { %4314 = vmatpush3.bf16.msra.mxu1 %v4311_v46 }
 0xf9f   :  { %4019 = vmatmul.mubr.msk.f32.vlgmr.msra.gmra.mrb[16].mxu1 %vm200_vm2, %v5030_v16 }
0x1062   :  { %v3980_v47 = vpop.f32.mrb[12].mxu1 }
0x1063   :  { %v2001_v48 = vmul.f32 0.25, %v3980_v47  ;;  %v1991_v49 = vpop.f32.mrb[13].mxu1 }
0x1064   :  { %v2000_v50 = vmul.f32 0.25, %v1991_v49 }
0x1065   :  { %v2003_v51 = vadd.f32 %v2001_v48, %v4858_v55 }
0x1066   :  { %v2002_v53 = vadd.f32 %v2000_v50, %v4853_v52 }
0x1067   :  { %v2007_v54 = vsel %vm512_vm3, %v2003_v51, -inf }
0x1068   :  { %2008 = vmax.xlane.f32.xlu0 %v2007_v54  ;;  %v2004_v56 = vsel %vm512_vm3, %v2002_v53, -inf  ;;  %v3513_v54 = vld [vmem:[%s5445_s6 + $0x38] sm:$0xff] }
0x1069   :  { %2005 = vmax.xlane.f32.xlu1 %v2004_v56 }
0x106a   :  { %v3998_v58 = vpop.f32.mrb[14].mxu1 }
0x106b   :  { %v2195_v59 = vadd.f32 %v3998_v58, %v3487_v57  ;;  %v2189_v60 = vpop.f32.mrb[15].mxu1 }
0x106c   :  { %v2190_v29 = vadd.f32 %v3487_v57, %v2189_v60 }
0x1072   :  { %v4020_v62 = vpop.f32.mrb[16].mxu1 }
0x1073   :  { %v2371_v63 = vadd.f32 %v4020_v62, %v3503_v61  ;;  %v2365_v0 = vpop.f32.mrb[17].mxu1 }
0x1074   :  { %v2366_v1 = vadd.f32 %v3503_v61, %v2365_v0  ;;  %v3481_v0 = vld [vmem:[%s5445_s6 + $0x28] sm:$0xff] }
0x1076   :  { %v4321_v2 = vpack.c.bf16 %v2371_v63, %v2366_v1  ;;  %v3480_v63 = vld [vmem:[%s5445_s6 + $0x20] sm:$0xff] }
0x1077   :  { %v4329_v1 = vpack.c.bf16 %v3481_v0, %v3480_v63 }
0x1078   :  { %4322 = vmatprep.subr.bf16.mxu1 %v4321_v2 }
0x1079   :  { %4324 = vmatpush3.bf16.msra.mxu1 %v4321_v2 }
0x10f5   :  { %v2009_v3 = vpop.xlane.xlu0 %2008 }
0x10f6   :  { %v2011_v4 = vsub.f32 %v2003_v51, %v2009_v3  ;;  %v2006_v5 = vpop.xlane.xlu1 %2005 }
0x10f7   :  { %v2010_v6 = vsub.f32 %v2002_v53, %v2006_v5  ;;  %v3512_v53 = vld [vmem:[%s5445_s6 + $0x30] sm:$0xff] }
0x10f8   :  { %v2014_v8 = vmul.f32 1.442695, %v2011_v4  ;;  %v4325_v56 = vpack.c.bf16 %v3513_v54, %v3512_v53  ;;  %v3519_v4 = vld [vmem:[%s5446_s9 + $0x1] ss:$0 sm:$0xff]  ;;  %v3538_v53 = vld [vmem:[%s5392_s17 + $0x70] sm:$0xff]  ;;  %v3539_v54 = vld [vmem:[%s5392_s17 + $0x78] sm:$0xff] }
0x10f9   :  { %v2012_v9 = vmul.f32 1.442695, %v2010_v6 }
0x10fa   :  { %4455 = vpow2.f32 %v2014_v8 }
0x10fb   :  { %4457 = vpow2.f32 %v2012_v9 }
0x1104   :  { %v4456_v10 = vpop.eup %4455 }
0x1105   :  { %v4458_v11 = vpop.eup %4457  ;;  %v2019_v13 = vsel %vm512_vm3, %v4456_v10, 0.0 }
0x1106   :  { %2020 = vadd.xlane.f32.xlu0 %v2019_v13  ;;  %v2016_v14 = vsel %vm512_vm3, %v4458_v11, 0.0 }
0x1107   :  { %2017 = vadd.xlane.f32.xlu1 %v2016_v14 }
0x1193   :  { %v2021_v20 = vpop.xlane.xlu0 %2020 }
0x1194   :  { %4459 = vrcp.f32 %v2021_v20  ;;  %v2018_v21 = vpop.xlane.xlu1 %2017 }
0x1195   :  { %4461 = vrcp.f32 %v2018_v21 }
0x119e   :  { %v4460_v22 = vpop.eup %4459 }
0x119f   :  { %v4462_v25 = vpop.eup %4461  ;;  %v2025_v27 = vmul.f32 %v4460_v22, %v4456_v10 }
0x11a0   :  { %v2024_v26 = vmul.f32 %v4462_v25, %v4458_v11 }
0x11a2   :  { %3985 = vmatprep.mubr.msk.f32.mxu0 %vm512_vm3, %v2024_v26  ;;  %v3525_v26 = vld [vmem:[%s5390_s15 + $0x28] sm:$0xff] }
0x11a3   :  { %3986 = vmatmul.mubr.msk.f32.vlgmr.msra.gmra.mrb[22].mxu0 %vm512_vm3, %v2025_v27 }
0x11a4   :  { %4302 = vmatpush3.bf16.msra.mxu0 %v4299_v19  ;;  %4007 = vmatprep.mubr.msk.f32.mxu0 %vm200_vm2, %v5032_v17 }
0x11a5   :  { %4304 = vmatprep.subr.bf16.mxu0 %v4303_v28 }
0x11a8   :  { %4306 = vmatpush3.bf16.msra.mxu0 %v4303_v28  ;;  %v3526_v28 = vld [vmem:[%s5390_s15 + $0x30] sm:$0xff] }
0x11ab   :  { %4008 = vmatmul.mubr.msk.f32.vlgmr.msra.gmra.mrb[24].mxu0 %vm200_vm2, %v5030_v16 }
0x11ac   :  { %4025 = vmatprep.mubr.msk.f32.mxu0 %vm512_vm3, %v2190_v29  ;;  %v3527_v29 = vld [vmem:[%s5390_s15 + $0x38] sm:$0xff] }
0x1276   :  { %v3987_v12 = vpop.f32.mrb[22].mxu0 }
0x1277   :  { %v2098_v7 = vpop.f32.mrb[23].mxu0 }
0x127e   :  { %v4009_v32 = vpop.f32.mrb[24].mxu0 }
0x127f   :  { %v2283_v33 = vadd.f32 %v4009_v32, %v3495_v30  ;;  %v2277_v34 = vpop.f32.mrb[25].mxu0 }
0x1280   :  { %v2278_v35 = vadd.f32 %v3495_v30, %v2277_v34 }
0x1282   :  { %v4315_v36 = vpack.c.bf16 %v2283_v33, %v2278_v35 }
0x1284   :  { %4317 = vmatprep.subr.msk.bf16.mxu0 %vm4812_vm4, %v4315_v36 }
0x1285   :  { %4320 = vmatpush3.bf16.xpose.msk.msra.mxu0 %vm4812_vm4, %v4315_v36 }
0x1286   :  { %4326 = vmatprep.subr.bf16.mxu0 %v4325_v56 }
0x128c   :  { %4026 = vmatmul.mubr.msk.f32.vlgmr.msra.gmra.mrb[26].mxu0 %vm512_vm3, %v2195_v59 }
0x128d   :  { %4328 = vmatpush3.bf16.msra.mxu0 %v4325_v56  ;;  %v4353_v56 = vpack.c.bf16 %v3539_v54, %v3538_v53 }
0x128e   :  { %4330 = vmatprep.subr.bf16.mxu0 %v4329_v1 }
0x135f   :  { %v4027_v37 = vpop.f32.mrb[26].mxu0 }
0x1360   :  { %v2462_v38 = vmul.f32 0.25, %v4027_v37  ;;  %v2452_v39 = vpop.f32.mrb[27].mxu0  ;;  %v3522_v37 = vld [vmem:[%s5388_s13 + $0x1] ss:$0 sm:$0xff] }
0x1361   :  { %v2461_v40 = vmul.f32 0.25, %v2452_v39 }
0x1362   :  { %v2464_v41 = vadd.f32 %v2462_v38, %v4858_v55 }
0x1363   :  { %v2463_v42 = vadd.f32 %v2461_v40, %v4853_v52 }
0x1364   :  { %v2468_v43 = vsel %vm512_vm3, %v2464_v41, -inf }
0x1365   :  { %2469 = vmax.xlane.f32.xlu0 %v2468_v43  ;;  %v2465_v44 = vsel %vm512_vm3, %v2463_v42, -inf }
0x1366   :  { %2466 = vmax.xlane.f32.xlu1 %v2465_v44 }
0x13f2   :  { %v2470_v45 = vpop.xlane.xlu0 %2469 }
0x13f3   :  { %v2472_v46 = vsub.f32 %v2464_v41, %v2470_v45  ;;  %v2467_v31 = vpop.xlane.xlu1 %2466  ;;  %v3523_v41 = vld [vmem:[%s5389_s14 + $0x1] ss:$0 sm:$0xff] }
0x13f4   :  { %v2471_v47 = vsub.f32 %v2463_v42, %v2467_v31  ;;  %v3533_v31 = vld [vmem:[%s5392_s17 + $0x48] sm:$0xff] }
0x13f5   :  { %v2475_v48 = vmul.f32 1.442695, %v2472_v46  ;;  %v3532_v46 = vld [vmem:[%s5392_s17 + $0x40] sm:$0xff] }
0x13f6   :  { %v2473_v49 = vmul.f32 1.442695, %v2471_v47  ;;  %v4341_v47 = vpack.c.bf16 %v3533_v31, %v3532_v46 }
0x13f7   :  { %4463 = vpow2.f32 %v2475_v48  ;;  %v3534_v48 = vld [vmem:[%s5392_s17 + $0x50] sm:$0xff] }
0x13f8   :  { %4465 = vpow2.f32 %v2473_v49  ;;  %v3535_v49 = vld [vmem:[%s5392_s17 + $0x58] sm:$0xff] }
0x1401   :  { %v4464_v50 = vpop.eup %4463 }
0x1402   :  { %v4466_v51 = vpop.eup %4465  ;;  %v2480_v55 = vsel %vm512_vm3, %v4464_v50, 0.0 }
0x1403   :  { %2481 = vadd.xlane.f32.xlu0 %v2480_v55  ;;  %v2477_v52 = vsel %vm512_vm3, %v4466_v51, 0.0  ;;  %v3537_v55 = vld [vmem:[%s5392_s17 + $0x68] sm:$0xff] }
0x1404   :  { %2478 = vadd.xlane.f32.xlu1 %v2477_v52 }
0x1490   :  { %v2482_v57 = vpop.xlane.xlu0 %2481 }
0x1491   :  { %4467 = vrcp.f32 %v2482_v57  ;;  %v2479_v58 = vpop.xlane.xlu1 %2478  ;;  %v3529_v57 = vld [vmem:[%s5391_s16 + $0x1] ss:$0 sm:$0xff]  ;;  %s5450_s16 = sld [smem:[#allocation19_spill]] }
0x1492   :  { %4469 = vrcp.f32 %v2479_v58 }
0x149b   :  { %v4468_v59 = vpop.eup %4467 }
0x149c   :  { %v4470_v60 = vpop.eup %4469  ;;  %v2486_v62 = vmul.f32 %v4468_v59, %v4464_v50  ;;  %v3536_v50 = vld [vmem:[%s5392_s17 + $0x60] sm:$0xff] }
0x149d   :  { %v2485_v61 = vmul.f32 %v4470_v60, %v4466_v51  ;;  %v4345_v51 = vpack.c.bf16 %v3535_v49, %v3534_v48  ;;  %v4349_v52 = vpack.c.bf16 %v3537_v55, %v3536_v50  ;;  %v3546_v48 = vld [vmem:[%s5394_s19 + $0x1] ss:$0 sm:$0xff] }
0x149f   :  { %4032 = vmatprep.mubr.msk.f32.mxu1 %vm512_vm3, %v2485_v61 }
0x14a0   :  { %4033 = vmatmul.mubr.msk.f32.vlgmr.msra.gmra.mrb[18].mxu1 %vm512_vm3, %v2486_v62 }
0x1573   :  { %v4034_v2 = vpop.f32.mrb[18].mxu1 }
0x1574   :  { %v2559_v3 = vpop.f32.mrb[19].mxu1 }
0x1575   :  { %4039 = vmatprep.mubr.msk.f32.mxu0 %vm512_vm3, %v2559_v3 }
0x1576   :  { %4040 = vmatmul.mubr.msk.f32.vlgmr.msra.gmra.mrb[28].mxu0 %vm512_vm3, %v4034_v2 }
0x1577   :  { %4332 = vmatpush3.bf16.msra.mxu0 %v4329_v1  ;;  %4046 = vmatprep.mubr.msk.f32.mxu0 %vm512_vm3, %v2098_v7 }
0x1578   :  { %4342 = vmatprep.subr.bf16.mxu0 %v4341_v47 }
0x157e   :  { %4047 = vmatmul.mubr.msk.f32.vlgmr.msra.gmra.mrb[28].mxu0 %vm512_vm3, %v3987_v12  ;;  %v4337_v12 = vpack.c.bf16 %v3527_v29, %v3526_v28 }
0x157f   :  { %4344 = vmatpush3.bf16.msra.mxu0 %v4341_v47 }
0x1580   :  { %4346 = vmatprep.subr.bf16.mxu0 %v4345_v51 }
0x1583   :  { %4348 = vmatpush3.bf16.msra.mxu0 %v4345_v51  ;;  %v3547_v51 = vld [vmem:[%s5395_s20 + $0x1] ss:$0 sm:$0xff] }
0x1584   :  { %4350 = vmatprep.subr.bf16.mxu0 %v4349_v52 }
0x1587   :  { %4352 = vmatpush3.bf16.msra.mxu0 %v4349_v52 }
0x1588   :  { %4354 = vmatprep.subr.bf16.mxu0 %v4353_v56 }
0x158b   :  { %4356 = vmatpush3.bf16.msra.mxu0 %v4353_v56 }
0x1651   :  { %v4048_v5 = vpop.f32.mrb[28].mxu0 }
0x1652   :  { %v2742_v6 = vadd.f32 %v4048_v5, %v3519_v4  ;;  %v2724_v8 = vpop.f32.mrb[29].mxu0 }
0x1653   :  { %v2741_v9 = vadd.f32 %v3519_v4, %v2724_v8 }
0x1654   :  { %v2744_v10 = vadd.f32 %v2742_v6, %v5030_v16 }
0x1655   :  { %v2743_v11 = vadd.f32 %v2741_v9, %v5032_v17  ;;  %v3524_v17 = vld [vmem:[%s5390_s15 + $0x20] sm:$0xff] }
0x1656   :  { %v2752_v13 = vsel %vm200_vm2, %v2744_v10, 0.0  ;;  %v4333_v27 = vpack.c.bf16 %v3525_v26, %v3524_v17 }
0x1657   :  { %2753 = vadd.xlane.f32.xlu0 %v2752_v13  ;;  %v2749_v14 = vsel %vm200_vm2, %v2743_v11, 0.0 }
0x1658   :  { %2750 = vadd.xlane.f32.xlu1 %v2749_v14  ;;  %4334 = vmatprep.subr.bf16.mxu1 %v4333_v27 }
0x1659   :  { %4336 = vmatpush3.bf16.msra.mxu1 %v4333_v27 }
0x165a   :  { %4338 = vmatprep.subr.bf16.mxu1 %v4337_v12 }
0x165d   :  { %4340 = vmatpush3.bf16.msra.mxu1 %v4337_v12 }
0x16e4   :  { %v2754_v15 = vpop.xlane.xlu0 %2753 }
0x16e5   :  { %v2756_v18 = vmul.f32 0.03125, %v2754_v15  ;;  %v2751_v19 = vpop.xlane.xlu1 %2750 }
0x16e6   :  { %v2755_v20 = vmul.f32 0.03125, %v2751_v19 }
0x16e7   :  { %v2758_v21 = vsub.f32 %v2744_v10, %v2756_v18 }
0x16e8   :  { %v2757_v22 = vsub.f32 %v2743_v11, %v2755_v20  ;;  %v3541_v20 = vld [vmem:[%s5393_s18 + $0x1] ss:$0 sm:$0xff] }
0x16e9   :  { %v2760_v23 = vmul.f32 %v2758_v21, %v2758_v21 }
0x16ea   :  { %v2759_v24 = vmul.f32 %v2757_v22, %v2757_v22 }
0x16eb   :  { %v2764_v25 = vsel %vm200_vm2, %v2760_v23, 0.0 }
0x16ec   :  { %2765 = vadd.xlane.f32.xlu0 %v2764_v25  ;;  %v2761_v16 = vsel %vm200_vm2, %v2759_v24, 0.0 }
0x16ed   :  { %2762 = vadd.xlane.f32.xlu1 %v2761_v16 }
0x1779   :  { %v2766_v7 = vpop.xlane.xlu0 %2765 }
0x177a   :  { %v2768_v30 = vmul.f32 0.03125, %v2766_v7  ;;  %v2763_v32 = vpop.xlane.xlu1 %2762 }
0x177b   :  { %v2767_v33 = vmul.f32 0.03125, %v2763_v32 }
0x177c   :  { %v2770_v34 = vadd.f32 1e-12, %v2768_v30 }
0x177d   :  { %v2769_v35 = vadd.f32 1e-12, %v2767_v33 }
0x177e   :  { %4471 = vrsqrt.f32 %v2770_v34 }
0x177f   :  { %4473 = vrsqrt.f32 %v2769_v35 }
0x1788   :  { %v4472_v36 = vpop.eup %4471 }
0x1789   :  { %v4474_v38 = vpop.eup %4473  ;;  %v2774_v39 = vmul.f32 %v4472_v36, %v2758_v21  ;;  %v3052_v36 = vld [vmem:[%s5396_s21] sm:$0xff] }
0x178a   :  { %v2773_v40 = vmul.f32 %v4474_v38, %v2757_v22 }
0x178b   :  { %v2782_v42 = vmul.f32 %v3522_v37, %v2774_v39  ;;  %v3054_v39 = vld [vmem:[%s5396_s21 + $0x10] sm:$0xff] }
0x178c   :  { %v2781_v43 = vmul.f32 %v3522_v37, %v2773_v40  ;;  %v3053_v37 = vld [vmem:[%s5396_s21 + $0x8] sm:$0xff]  ;;  %v3055_v40 = vld [vmem:[%s5396_s21 + $0x18] sm:$0xff] }
0x178d   :  { %v2790_v45 = vadd.f32 %v3523_v41, %v2782_v42  ;;  %v4357_v38 = vpack.c.bf16 %v3053_v37, %v3052_v36  ;;  %v3217_v36 = vld [vmem:[%s5400_s25 + $0x58] sm:$0xff] }
0x178e   :  { %v2789_v44 = vadd.f32 %v3523_v41, %v2781_v43  ;;  %v4361_v41 = vpack.c.bf16 %v3055_v40, %v3054_v39 }
0x178f   :  { %4358 = vmatprep.subr.bf16.mxu1 %v4357_v38 }
0x1790   :  { %4057 = vmatprep.mubr.msk.f32.mxu1 %vm200_vm2, %v2789_v44 }
0x1791   :  { %4058 = vmatmul.mubr.msk.f32.vlgmr.msra.gmra.mrb[20].mxu1 %vm200_vm2, %v2790_v45 }
0x1792   :  { %4360 = vmatpush3.bf16.msra.mxu1 %v4357_v38 }
0x1793   :  { %4362 = vmatprep.subr.bf16.mxu1 %v4361_v41 }
0x1796   :  { %4364 = vmatpush3.bf16.msra.mxu1 %v4361_v41 }
0x1864   :  { %v4059_v58 = vpop.f32.mrb[20].mxu1 }
0x1865   :  { %v2882_v59 = vadd.f32 %v4059_v58, %v3529_v57  ;;  %v2876_v60 = vpop.f32.mrb[21].mxu1 }
0x1866   :  { %v2877_v61 = vadd.f32 %v3529_v57, %v2876_v60  ;;  %v3550_v57 = vld [vmem:[%s5397_s22] ss:$0 sm:$0xff] }
0x1867   :  { %v2888_v62 = vmul.f32 0.044715, %v2882_v59  ;;  %v2886_v15 = vmul.f32 0.5, %v2882_v59 }
0x1868   :  { %v2887_v63 = vmul.f32 0.044715, %v2877_v61  ;;  %v2885_v13 = vmul.f32 0.5, %v2877_v61 }
0x1869   :  { %v2890_v0 = vmul.f32 %v2888_v62, %v2882_v59 }
0x186a   :  { %v2889_v1 = vmul.f32 %v2887_v63, %v2877_v61 }
0x186b   :  { %v2892_v2 = vmul.f32 %v2890_v0, %v2882_v59 }
0x186c   :  { %v2891_v3 = vmul.f32 %v2889_v1, %v2877_v61 }
0x186d   :  { %v2894_v4 = vadd.f32 %v2892_v2, %v2882_v59 }
0x186e   :  { %v2893_v5 = vadd.f32 %v2891_v3, %v2877_v61 }
0x186f   :  { %v2896_v6 = vmul.f32 0.7978846, %v2894_v4 }
0x1870   :  { %v2895_v8 = vmul.f32 0.7978846, %v2893_v5 }
0x1871   :  { %4475 = vtanh.f32 %v2896_v6 }
0x1872   :  { %4477 = vtanh.f32 %v2895_v8 }
0x187b   :  { %v4476_v9 = vpop.eup %4475 }
0x187c   :  { %v4478_v10 = vpop.eup %4477  ;;  %v2900_v11 = vadd.f32 1.0, %v4476_v9 }
0x187d   :  { %v2899_v14 = vadd.f32 1.0, %v4478_v10 }
0x187e   :  { %v2902_v19 = vmul.f32 %v2900_v11, %v2886_v15 }
0x187f   :  { %v2901_v18 = vmul.f32 %v2899_v14, %v2885_v13 }
0x1881   :  { %4076 = vmatprep.mubr.msk.f32.mxu0 %vm1512_vm5, %v2901_v18 }
0x1882   :  { %4077 = vmatmul.mubr.msk.f32.vlgmr.msra.gmra.mrb[30].mxu0 %vm1512_vm5, %v2902_v19 }
0x1955   :  { %v4078_v21 = vpop.f32.mrb[30].mxu0 }
0x1956   :  { %v2998_v22 = vadd.f32 %v4078_v21, %v3541_v20  ;;  %v2992_v23 = vpop.f32.mrb[31].mxu0 }
0x1957   :  { %v2993_v24 = vadd.f32 %v3541_v20, %v2992_v23  ;;  %v3207_v23 = vld [vmem:[%s5400_s25 + $0x8] sm:$0xff] }
0x1958   :  { %v3002_v25 = vadd.f32 %v2998_v22, %v2790_v45  ;;  %v3206_v22 = vld [vmem:[%s5400_s25] sm:$0xff] }
0x1959   :  { %v3001_v16 = vadd.f32 %v2993_v24, %v2789_v44 }
0x195a   :  { %v3010_v17 = vsel %vm200_vm2, %v3002_v25, 0.0 }
0x195b   :  { %3011 = vadd.xlane.f32.xlu0 %v3010_v17  ;;  %v3007_v26 = vsel %vm200_vm2, %v3001_v16, 0.0  ;;  %v3209_v17 = vld [vmem:[%s5400_s25 + $0x18] sm:$0xff] }
0x195c   :  { %3008 = vadd.xlane.f32.xlu1 %v3007_v26 }
0x19e8   :  { %v3012_v27 = vpop.xlane.xlu0 %3011 }
0x19e9   :  { %v3014_v28 = vmul.f32 0.03125, %v3012_v27  ;;  %v3009_v29 = vpop.xlane.xlu1 %3008  ;;  %v3210_v27 = vld [vmem:[%s5400_s25 + $0x20] sm:$0xff] }
0x19ea   :  { %v3013_v12 = vmul.f32 0.03125, %v3009_v29 }
0x19eb   :  { %v3016_v7 = vsub.f32 %v3002_v25, %v3014_v28  ;;  %v4365_v25 = vpack.c.bf16 %v3207_v23, %v3206_v22  ;;  %v3211_v28 = vld [vmem:[%s5400_s25 + $0x28] sm:$0xff] }
0x19ec   :  { %v3015_v30 = vsub.f32 %v3001_v16, %v3013_v12  ;;  %v3208_v16 = vld [vmem:[%s5400_s25 + $0x10] sm:$0xff]  ;;  %v4377_v29 = vpack.c.bf16 %v3211_v28, %v3210_v27 }
0x19ed   :  { %v3018_v32 = vmul.f32 %v3016_v7, %v3016_v7  ;;  %v4371_v26 = vpack.c.bf16 %v3209_v17, %v3208_v16  ;;  %4367 = vmatprep.subr.msk.bf16.mxu1 %vm5272_vm6, %v4365_v25  ;;  %v3212_v12 = vld [vmem:[%s5400_s25 + $0x30] sm:$0xff] }
0x19ee   :  { %v3017_v33 = vmul.f32 %v3015_v30, %v3015_v30 }
0x19ef   :  { %v3022_v34 = vsel %vm200_vm2, %v3018_v32, 0.0  ;;  %v3214_v32 = vld [vmem:[%s5400_s25 + $0x40] sm:$0xff] }
0x19f0   :  { %3023 = vadd.xlane.f32.xlu0 %v3022_v34  ;;  %v3019_v35 = vsel %vm200_vm2, %v3017_v33, 0.0  ;;  %v3215_v33 = vld [vmem:[%s5400_s25 + $0x48] sm:$0xff] }
0x19f1   :  { %3020 = vadd.xlane.f32.xlu1 %v3019_v35  ;;  %v4389_v34 = vpack.c.bf16 %v3215_v33, %v3214_v32  ;;  %v3216_v35 = vld [vmem:[%s5400_s25 + $0x50] sm:$0xff] }
0x19f2   :  { %v4395_v37 = vpack.c.bf16 %v3217_v36, %v3216_v35 }
0x1a7d   :  { %v3024_v42 = vpop.xlane.xlu0 %3023 }
0x1a7e   :  { %v3026_v43 = vmul.f32 0.03125, %v3024_v42  ;;  %v3021_v44 = vpop.xlane.xlu1 %3020 }
0x1a7f   :  { %v3025_v45 = vmul.f32 0.03125, %v3021_v44 }
0x1a80   :  { %v3028_v46 = vadd.f32 1e-12, %v3026_v43 }
0x1a81   :  { %v3027_v31 = vadd.f32 1e-12, %v3025_v45 }
0x1a82   :  { %4479 = vrsqrt.f32 %v3028_v46 }
0x1a83   :  { %4481 = vrsqrt.f32 %v3027_v31 }
0x1a8c   :  { %v4480_v47 = vpop.eup %4479 }
0x1a8d   :  { %v4482_v49 = vpop.eup %4481  ;;  %v3032_v50 = vmul.f32 %v4480_v47, %v3016_v7  ;;  %v3213_v7 = vld [vmem:[%s5400_s25 + $0x38] sm:$0xff]  ;;  %v3218_v47 = vld [vmem:[%s5400_s25 + $0x60] sm:$0xff] }
0x1a8e   :  { %v3031_v55 = vmul.f32 %v4482_v49, %v3015_v30  ;;  %v4383_v30 = vpack.c.bf16 %v3213_v7, %v3212_v12 }
0x1a8f   :  { %v3040_v52 = vmul.f32 %v3546_v48, %v3032_v50  ;;  %v3220_v50 = vld [vmem:[%s5400_s25 + $0x70] sm:$0xff] }
0x1a90   :  { %v3039_v53 = vmul.f32 %v3546_v48, %v3031_v55  ;;  %v3219_v48 = vld [vmem:[%s5400_s25 + $0x68] sm:$0xff] }
0x1a91   :  { %v3048_v54 = vadd.f32 %v3547_v51, %v3040_v52  ;;  %v4401_v49 = vpack.c.bf16 %v3219_v48, %v3218_v47 }
0x1a92   :  { %v3047_v56 = vadd.f32 %v3547_v51, %v3039_v53  ;;  %v3221_v51 = vld [vmem:[%s5400_s25 + $0x78] sm:$0xff] }
0x1a93   :  { %3549 = vst.msk [vmem:[%s5403_s28 + $0x28] sm:$0xff] %vm200_vm2, %v3048_v54  ;;  %v4407_v55 = vpack.c.bf16 %v3221_v51, %v3220_v50 }
0x1a94   :  { %3548 = vst.msk [vmem:[%s5403_s28 + $0x20] sm:$0xff] %vm200_vm2, %v3047_v56  ;;  %4087 = vmatprep.mubr.msk.f32.mxu1 %vm200_vm2, %v3047_v56 }
0x1a95   :  { %4088 = vmatmul.mubr.msk.f32.vlgmr.msra.gmra.mrb[22].mxu1 %vm200_vm2, %v3048_v54 }
0x1a96   :  { %4370 = vmatpush3.bf16.xpose.msk.msra.mxu1 %vm5272_vm6, %v4365_v25 }
0x1a97   :  { %4373 = vmatprep.subr.msk.bf16.mxu1 %vm5272_vm6, %v4371_v26 }
0x1a9e   :  { %4376 = vmatpush3.bf16.xpose.msk.msra.mxu1 %vm5272_vm6, %v4371_v26 }
0x1a9f   :  { %4379 = vmatprep.subr.msk.bf16.mxu1 %vm5272_vm6, %v4377_v29 }
0x1aa6   :  { %4382 = vmatpush3.bf16.xpose.msk.msra.mxu1 %vm5272_vm6, %v4377_v29 }
0x1aa7   :  { %4385 = vmatprep.subr.msk.bf16.mxu1 %vm5272_vm6, %v4383_v30 }
0x1aae   :  { %4388 = vmatpush3.bf16.xpose.msk.msra.mxu1 %vm5272_vm6, %v4383_v30 }
0x1aaf   :  { %4391 = vmatprep.subr.msk.bf16.mxu1 %vm5272_vm6, %v4389_v34 }
0x1ab6   :  { %4394 = vmatpush3.bf16.xpose.msk.msra.mxu1 %vm5272_vm6, %v4389_v34 }
0x1ab7   :  { %4397 = vmatprep.subr.msk.bf16.mxu1 %vm5272_vm6, %v4395_v37 }
0x1abe   :  { %4400 = vmatpush3.bf16.xpose.msk.msra.mxu1 %vm5272_vm6, %v4395_v37 }
0x1abf   :  { %4403 = vmatprep.subr.msk.bf16.mxu1 %vm5272_vm6, %v4401_v49 }
0x1ac6   :  { %4406 = vmatpush3.bf16.xpose.msk.msra.mxu1 %vm5272_vm6, %v4401_v49 }
0x1ac7   :  { %4409 = vmatprep.subr.msk.bf16.mxu1 %vm5272_vm6, %v4407_v55 }
0x1ace   :  { %4412 = vmatpush3.bf16.xpose.msk.msra.mxu1 %vm5272_vm6, %v4407_v55 }
0x1b68   :  { %v4089_v58 = vpop.f32.mrb[22].mxu1 }
0x1b69   :  { %v3141_v59 = vadd.f32 %v4089_v58, %v3550_v57  ;;  %v3135_v60 = vpop.f32.mrb[23].mxu1 }
0x1b6a   :  { %v3136_v61 = vadd.f32 %v3550_v57, %v3135_v60  ;;  %v3553_v60 = vld [vmem:[%s5398_s23] ss:$0 sm:$0xff]  ;;  %s4517_s23 = smov [#allocation2]  }
0x1b6b   :  { %v3147_v62 = vmul.f32 0.044715, %v3141_v59  ;;  %v3145_v11 = vmul.f32 0.5, %v3141_v59  ;;  %s3365_s17 = sshll.u32 %s4517_s23, 4  ;;  %s3366_s17 = int_to_ptr.vmem [resolvable:$true] %s3365_s17 }
0x1b6c   :  { %v3146_v63 = vmul.f32 0.044715, %v3136_v61  ;;  %v3144_v14 = vmul.f32 0.5, %v3136_v61  ;;  %s4491_s18 = scalar_lea.vmem %s3366_s17, 256  ;;  %p4496_p1 = scmp.lt.s32.totalorder %s3366_s17, %s3366_s17 }
0x1b6d   :  { %v3149_v0 = vmul.f32 %v3147_v62, %v3141_v59  ;;  %p4492_p0 = scmp.ne.s32.totalorder %s3366_s17, %s4491_s18  ;;  %p4497_p2 = scmp.lt.s32.totalorder %s4491_s18, %s4491_s18 }
0x1b6e   :  { %v3148_v1 = vmul.f32 %v3146_v63, %v3136_v61 }
0x1b6f   :  { %v3151_v2 = vmul.f32 %v3149_v0, %v3141_v59  ;;  %v3554_v0 = vld [vmem:[%s5449_s11] ss:$0 sm:$0xff]  ;;  %p4498_p3 = por %p4497_p2, %p4496_p1 }
0x1b70   :  { %v3150_v3 = vmul.f32 %v3148_v1, %v3136_v61 }
0x1b71   :  { %v3153_v4 = vadd.f32 %v3151_v2, %v3141_v59  ;;  %p4499_p4 = pnand %p4498_p3, %p4492_p0 }
0x1b72   :  { %v3152_v5 = vadd.f32 %v3150_v3, %v3136_v61 }
0x1b73   :  { %v3155_v6 = vmul.f32 0.7978846, %v3153_v4 }
0x1b74   :  { %v3154_v8 = vmul.f32 0.7978846, %v3152_v5  ;;  %v3555_v5 = vld [vmem:[%s5450_s16] ss:$0 sm:$0xff] }
0x1b75   :  { %4483 = vtanh.f32 %v3155_v6 }
0x1b76   :  { %4485 = vtanh.f32 %v3154_v8 }
0x1b7f   :  { %v4484_v9 = vpop.eup %4483 }
0x1b80   :  { %v4486_v10 = vpop.eup %4485  ;;  %v3159_v13 = vadd.f32 1.0, %v4484_v9 }
0x1b81   :  { %v3158_v15 = vadd.f32 1.0, %v4486_v10 }
0x1b82   :  { %v3161_v18 = vmul.f32 %v3159_v13, %v3145_v11 }
0x1b83   :  { %v3160_v19 = vmul.f32 %v3158_v15, %v3144_v14 }
0x1b84   :  { %v3167_v20 = vsel %vm200_vm2, %v3161_v18, 0.0 }
0x1b85   :  { %3168 = vadd.xlane.f32.xlu0 %v3167_v20  ;;  %v3164_v21 = vsel %vm200_vm2, %v3160_v19, 0.0 }
0x1b86   :  { %3165 = vadd.xlane.f32.xlu1 %v3164_v21 }
0x1c12   :  { %v3169_v38 = vpop.xlane.xlu0 %3168 }
0x1c13   :  { %v3171_v39 = vmul.f32 0.03125, %v3169_v38  ;;  %v3166_v40 = vpop.xlane.xlu1 %3165 }
0x1c14   :  { %v3170_v41 = vmul.f32 0.03125, %v3166_v40 }
0x1c15   :  { %v3173_v42 = vsub.f32 %v3161_v18, %v3171_v39 }
0x1c16   :  { %v3172_v43 = vsub.f32 %v3160_v19, %v3170_v41 }
0x1c17   :  { %v3175_v44 = vmul.f32 %v3173_v42, %v3173_v42 }
0x1c18   :  { %v3174_v45 = vmul.f32 %v3172_v43, %v3172_v43 }
0x1c19   :  { %v3179_v46 = vsel %vm200_vm2, %v3175_v44, 0.0 }
0x1c1a   :  { %3180 = vadd.xlane.f32.xlu0 %v3179_v46  ;;  %v3176_v31 = vsel %vm200_vm2, %v3174_v45, 0.0 }
0x1c1b   :  { %3177 = vadd.xlane.f32.xlu1 %v3176_v31 }
0x1ca7   :  { %v3181_v52 = vpop.xlane.xlu0 %3180 }
0x1ca8   :  { %v3183_v53 = vmul.f32 0.03125, %v3181_v52  ;;  %v3178_v54 = vpop.xlane.xlu1 %3177 }
0x1ca9   :  { %v3182_v56 = vmul.f32 0.03125, %v3178_v54 }
0x1caa   :  { %v3185_v57 = vadd.f32 1e-12, %v3183_v53 }
0x1cab   :  { %v3184_v58 = vadd.f32 1e-12, %v3182_v56 }
0x1cac   :  { %4487 = vrsqrt.f32 %v3185_v57 }
0x1cad   :  { %4489 = vrsqrt.f32 %v3184_v58 }
0x1cb6   :  { %v4488_v59 = vpop.eup %4487 }
0x1cb7   :  { %v4490_v61 = vpop.eup %4489  ;;  %v3189_v62 = vmul.f32 %v4488_v59, %v3173_v42 }
0x1cb8   :  { %v3188_v63 = vmul.f32 %v4490_v61, %v3172_v43 }
0x1cb9   :  { %v3197_v1 = vmul.f32 %v3553_v60, %v3189_v62 }
0x1cba   :  { %v3196_v2 = vmul.f32 %v3553_v60, %v3188_v63 }
0x1cbb   :  { %v3205_v4 = vadd.f32 %v3554_v0, %v3197_v1 }
0x1cbc   :  { %v3204_v3 = vadd.f32 %v3554_v0, %v3196_v2 }
0x1cbe   :  { %4122 = vmatprep.mubr.msk.f32.mxu1 %vm200_vm2, %v3204_v3 }
0x1cbf   :  { %4123 = vmatmul.mubr.msk.f32.vlgmr.msra.gmra.mrb[24].mxu1 %vm200_vm2, %v3205_v4 }
0x1d92   :  { %v4124_v6 = vpop.f32.mrb[24].mxu1 }
0x1d93   :  { %v3355_v8 = vadd.f32 %v4124_v6, %v3555_v5  ;;  %v3349_v9 = vpop.f32.mrb[25].mxu1 }
0x1d94   :  { %v3350_v10 = vadd.f32 %v3555_v5, %v3349_v9 }
0x1d95   :  { %3359 = vst [vmem:[#allocation2 + $0x8] sm:$0xff] %v3355_v8 }
0x1d96   :  { %3358 = vst [vmem:[#allocation2] sm:$0xff] %v3350_v10 }
0x1d97   :  { %4502 = shalt.err (!%p4499_p4)
}
0x1d98   :  { %s5451_s12 = sld [smem:[#allocation20_spill]] }
0x1d9e   :  { %s4503_s3 = scalar_lea.hbm %s5451_s12, 256 }
0x1d9f   :  { %p4504_p5 = scmp.ne.s32.totalorder %s5451_s12, %s4503_s3  ;;  %p4507_p6 = scmp.lt.u32.totalorder %s4503_s3, %s5451_s12 }
0x1da1   :  { %p4509_p7 = pnand %p4507_p6, %p4504_p5 }
0x1da3   :  { %4512 = shalt.err (!%p4509_p7)
}
0x1da4   :  { %s4518_s0 = smov 128   ;;  %s4519_s21 = smov 8  }
0x1da5   :  { %3371 = dma.vmem_to_hbm [thread:$0]  %s3366_s17, 256, %s5451_s12, [#allocation3], %s4518_s0, %s4518_s0, %s4519_s21  }
0x1da6   :  { %4513 = dma.done.wait [#allocation3], 256  }
0x1da7   :  { %4514 = vsyncadd [#allocation3], 4294967040 }
0x1da8   :  { %3379 = vsyncpa [#allocation3], 1 }

</bundles_post_ra>
